<compile_context>
chip_gen: v7x
topology: tpu7x:2x2x1
jax: 0.10.0
libtpu: 0.0.40
codegen_flags: <defaults>
</compile_context>

<pallas_src>
import functools

import numpy as np
import jax
import jax.numpy as jnp
from jax import lax
from jax.experimental import pallas as pl
from jax.experimental.pallas import tpu as pltpu

PRELU_A = 0.25   # nn.PReLU() default init
BN_EPS = 1e-5


# ----------------------------- fused Pallas kernel -----------------------------

def ubneck_kernel(x_ref, xh_ref, pq_ref,
                  w1_ref, wm_ref, bm_ref, s1_ref, b1_ref,
                  w2_ref, s1c_ref, b1c_ref,
                  w3_ref, s2c_ref, b2c_ref,
                  o_ref, *, img_w, blocks_per_img):
    f32 = jnp.float32
    x = x_ref[...]                                                   # (tm, Cin) bf16

    # --- stage 1: convt1 (1x1) + BN1(eval) + PReLU, and main_conv (1x1) + bias ---
    t1 = jnp.dot(x, w1_ref[...], preferred_element_type=f32)
    t1 = t1 * s1_ref[...] + b1_ref[...]
    t1 = jnp.where(t1 >= 0, t1, PRELU_A * t1)                        # (tm, red) f32
    mc = jnp.dot(x, wm_ref[...], preferred_element_type=f32) + bm_ref[...]   # (tm, Cout)

    # --- halo: the first image row of the NEXT row-block of the SAME image,
    #     zeroed when this block is the last row-block of its image. ---
    xh = xh_ref[...]                                                 # (img_w, Cin)
    t1h = jnp.dot(xh, w1_ref[...], preferred_element_type=f32)
    t1h = t1h * s1_ref[...] + b1_ref[...]
    t1h = jnp.where(t1h >= 0, t1h, PRELU_A * t1h)                    # (img_w, red)
    rb = pl.program_id(0) % blocks_per_img
    t1h = t1h * jnp.where(rb == blocks_per_img - 1, 0.0, 1.0)

    tm, red = t1.shape
    # Shifted copies of t1 for the stride-2 3x3 transposed conv, built in VMEM.
    ext = jnp.concatenate([t1, t1h, jnp.zeros((1, red), f32)], axis=0)
    col = lax.broadcasted_iota(jnp.int32, (tm, red), 0) % img_w
    last_col = col == img_w - 1
    s01 = jnp.where(last_col, 0.0, ext[1:tm + 1, :])                     # t1(i,   j+1)
    s10 = ext[img_w:tm + img_w, :]                                       # t1(i+1, j  )
    s11 = jnp.where(last_col, 0.0, ext[img_w + 1:tm + img_w + 1, :])     # t1(i+1, j+1)
    xs = jnp.concatenate([t1, s01, s10, s11], axis=-1).astype(jnp.bfloat16)

    # --- convt2 (one block matmul over the 4 output parities) + BN1 + PReLU ---
    y = jnp.dot(xs, w2_ref[...], preferred_element_type=f32)            # (tm, 4*red)
    y = y * s1c_ref[...] + b1c_ref[...]
    y = jnp.where(y >= 0, y, PRELU_A * y)

    # --- convt3 (block-diagonal 1x1) + BN2; dropout is identity in eval ---
    z = jnp.dot(y.astype(jnp.bfloat16), w3_ref[...], preferred_element_type=f32)
    z = z * s2c_ref[...] + b2c_ref[...]                                 # (tm, 4*Cout)

    # --- MaxUnpool2d skip branch: parity-select main_conv output.
    #     Integer compare of the loaded parity code; no replication matmuls. ---
    pq = pq_ref[...].astype(jnp.int32)                                  # (tm, Cout) 0..3
    up = jnp.concatenate(
        [jnp.where(pq == parity, mc, 0.0) for parity in range(4)], axis=-1)

    t = z + up
    o_ref[...] = jnp.where(t >= 0, t, PRELU_A * t).astype(o_ref.dtype)


# ----------------------------- weight packing / glue -----------------------------

def _bn_affine(gamma, beta, mean, var):
    s = gamma / jnp.sqrt(var + BN_EPS)
    return s, beta - mean * s


def _pack_w2_block(w2):
    """Pack ConvTranspose2d(3,3,stride=2,pad=1,opad=1) weight (in, out, 3, 3)
    into one (4*red, 4*red) block matrix.  Row-blocks = shifted input copies
    [x(i,j), x(i,j+1), x(i+1,j), x(i+1,j+1)]; column-blocks = output parities
    [ee, eo, oe, oo]."""
    red = w2.shape[0]
    Wk = jnp.transpose(w2, (2, 3, 0, 1)).astype(jnp.float32)   # (kh, kw, ci, co)
    z = jnp.zeros((red, red), jnp.float32)
    rows = [
        [Wk[1, 1], Wk[1, 2], Wk[2, 1], Wk[2, 2]],   # x(i,   j  )
        [z,        Wk[1, 0], z,        Wk[2, 0]],   # x(i,   j+1)
        [z,        z,        Wk[0, 1], Wk[0, 2]],   # x(i+1, j  )
        [z,        z,        z,        Wk[0, 0]],   # x(i+1, j+1)
    ]
    return jnp.concatenate([jnp.concatenate(r, axis=1) for r in rows], axis=0)


def _pack_w3_block(w3):
    """Block-diagonal (4*red, 4*Cout) so each output parity goes through convt3."""
    red, Cout = w3.shape
    w3f = w3.astype(jnp.float32)
    z = jnp.zeros((red, Cout), jnp.float32)
    rows = [jnp.concatenate([w3f if j == k else z for j in range(4)], axis=1)
            for k in range(4)]
    return jnp.concatenate(rows, axis=0)


def _pick_rows_per_block(N, H, W, Cin, red, Cout):
    """Image rows per grid step: as large as a ~24 MiB working-set budget allows
    (safe inside v7x's 64 MiB VMEM, ample headroom on v5e/v6e) while keeping
    >= 4 grid steps when possible so both v7x TensorCores pipeline."""
    per_px = 4 * Cin + 48 * red + 72 * Cout            # rough live-VMEM bytes / pixel
    px_cap = max(W, (24 << 20) // max(per_px, 1))
    divs = [d for d in range(1, H + 1) if H % d == 0 and (d * W) % 8 == 0]
    if not divs:
        divs = [d for d in range(1, H + 1) if H % d == 0]   # TODO(synk): pad odd widths
    for min_steps in (4, 2, 1):
        cands = [d for d in divs if d * W <= px_cap and (N * H) // d >= min_steps]
        if cands:
            return max(cands)
    return divs[0]


def max_unpool2x2(x_nchw, indices):
    """nn.MaxUnpool2d(2,2) as a scatter (used only by the pure-JAX reference)."""
    N, C, H, W = x_nchw.shape
    out = jnp.zeros((N, C, 4 * H * W), x_nchw.dtype)
    ni = jnp.arange(N)[:, None, None]
    ci = jnp.arange(C)[None, :, None]
    out = out.at[ni, ci, indices.reshape(N, C, H * W)].set(x_nchw.reshape(N, C, H * W))
    return out.reshape(N, C, 2 * H, 2 * W)


def ubneck_forward(x_nchw, indices, p):
    N, Cin, H, W = x_nchw.shape
    red = p['w1'].shape[1]
    Cout = p['w3'].shape[1]
    OW = 2 * W
    M = N * H * W

    s1, b1 = _bn_affine(*p['bn1'])
    s2, b2 = _bn_affine(*p['bn2'])
    s1r = s1.reshape(1, red)
    b1r = b1.reshape(1, red)
    s1c = jnp.tile(s1, 4).reshape(1, 4 * red)
    b1c = jnp.tile(b1, 4).reshape(1, 4 * red)
    s2c = jnp.tile(s2, 4).reshape(1, 4 * Cout)
    b2c = jnp.tile(b2, 4).reshape(1, 4 * Cout)
    bmr = p['bm'].astype(jnp.float32).reshape(1, Cout)

    w1 = p['w1'].astype(jnp.bfloat16)
    wm = p['wm'].astype(jnp.bfloat16)
    W2b = _pack_w2_block(p['w2']).astype(jnp.bfloat16)     # (4*red, 4*red)
    W3b = _pack_w3_block(p['w3']).astype(jnp.bfloat16)     # (4*red, 4*Cout)

    tr = _pick_rows_per_block(N, H, W, Cin, red, Cout)     # image rows per block
    tm = tr * W                                            # flattened rows per block
    bpi = H // tr                                          # row-blocks per image
    n_wrows = N * H                                        # total image rows

    # Channels-last flatten of x (single XLA pass over the smallest stream).
    x_flat = jnp.transpose(x_nchw, (0, 2, 3, 1)).reshape(M, Cin).astype(jnp.bfloat16)
    # MaxUnpool parity codes: index = (2i+r)*OW + (2j+s) -> code = 2r+s in 0..3.
    # Stored as bf16 (exact for 0..3) to halve the stream vs int32.
    idx = jnp.transpose(indices, (0, 2, 3, 1)).astype(jnp.int32)       # (N,H,W,Cout)
    pq = (2 * ((idx // OW) % 2) + (idx % 2)).reshape(M, Cout).astype(jnp.bfloat16)

    kernel = functools.partial(ubneck_kernel, img_w=W, blocks_per_img=bpi)

    out_cat = pl.pallas_call(
        kernel,
        out_shape=jax.ShapeDtypeStruct((M, 4 * Cout), jnp.bfloat16),
        grid=(M // tm,),
        in_specs=[
            pl.BlockSpec((tm, Cin), lambda i: (i, 0)),                       # x block
            pl.BlockSpec((W, Cin),                                           # halo row
                         lambda i: (jnp.minimum((i + 1) * tr, n_wrows - 1), 0)),
            pl.BlockSpec((tm, Cout), lambda i: (i, 0)),                      # parity codes
            pl.BlockSpec((Cin, red), lambda i: (0, 0)),                      # w1
            pl.BlockSpec((Cin, Cout), lambda i: (0, 0)),                     # wm
            pl.BlockSpec((1, Cout), lambda i: (0, 0)),                       # bm
            pl.BlockSpec((1, red), lambda i: (0, 0)),                        # s1
            pl.BlockSpec((1, red), lambda i: (0, 0)),                        # b1
            pl.BlockSpec((4 * red, 4 * red), lambda i: (0, 0)),              # W2 block
            pl.BlockSpec((1, 4 * red), lambda i: (0, 0)),                    # s1 (x4)
            pl.BlockSpec((1, 4 * red), lambda i: (0, 0)),                    # b1 (x4)
            pl.BlockSpec((4 * red, 4 * Cout), lambda i: (0, 0)),             # W3 block
            pl.BlockSpec((1, 4 * Cout), lambda i: (0, 0)),                   # s2 (x4)
            pl.BlockSpec((1, 4 * Cout), lambda i: (0, 0)),                   # b2 (x4)
        ],
        out_specs=pl.BlockSpec((tm, 4 * Cout), lambda i: (i, 0)),
        compiler_params=pltpu.CompilerParams(
            dimension_semantics=("parallel",),
            vmem_limit_bytes=48 * 1024 * 1024),
    )(x_flat, x_flat, pq, w1, wm, bmr, s1r, b1r, W2b, s1c, b1c, W3b, s2c, b2c)

    # Parity-interleave + NHWC -> NCHW to match the PyTorch module's output.
    # TODO(synk): consumers that accept parity-major NHWC output can skip this pass.
    out = out_cat.reshape(N, H, W, 2, 2, Cout).transpose(0, 5, 1, 3, 2, 4)
    return out.reshape(N, Cout, 2 * H, 2 * W)                         # NCHW, bf16


# ----------------------------- pure-JAX reference -----------------------------

def ref_forward(x_nchw, indices, p):
    f32 = jnp.float32
    x = x_nchw.astype(f32)
    w1 = p['w1'].astype(f32)
    w2 = p['w2'].astype(f32)
    w3 = p['w3'].astype(f32)
    wm = p['wm'].astype(f32)
    bm = p['bm'].astype(f32)

    def convt(t, w, stride, pad, opad):
        k = w.shape[2]
        w_conv = jnp.transpose(w[:, :, ::-1, ::-1], (1, 0, 2, 3))   # (Cout, Cin, k, k)
        return lax.conv_general_dilated(
            t, w_conv, window_strides=(1, 1),
            padding=[(k - 1 - pad, k - 1 - pad + opad)] * 2,
            lhs_dilation=(stride, stride),
            dimension_numbers=('NCHW', 'OIHW', 'NCHW'))

    def bn(t, g, b, m, v):
        s = g / jnp.sqrt(v + BN_EPS)
        return t * s[None, :, None, None] + (b - m * s)[None, :, None, None]

    def prelu(t):
        return jnp.where(t >= 0, t, PRELU_A * t)

    x1 = prelu(bn(convt(x, w1[:, :, None, None], 1, 0, 0), *p['bn1']))
    x2 = prelu(bn(convt(x1, w2, 2, 1, 1), *p['bn1']))
    x3 = bn(convt(x2, w3[:, :, None, None], 1, 0, 0), *p['bn2'])
    mc = lax.conv_general_dilated(x, jnp.transpose(wm)[:, :, None, None],
                                  (1, 1), [(0, 0), (0, 0)],
                                  dimension_numbers=('NCHW', 'OIHW', 'NCHW'))
    mc = mc + bm[None, :, None, None]
    up = max_unpool2x2(mc, indices)
    return prelu(x3 + up)


# ----------------------------- main -----------------------------

if __name__ == "__main__":
    key = jax.random.PRNGKey(0)
    N, Cin, Cout, H, W = 2, 16, 16, 16, 16
    ratio = 4
    red = Cin // ratio
    ks = jax.random.split(key, 16)

    x = jax.random.normal(ks[0], (N, Cin, H, W), jnp.float32).astype(jnp.bfloat16)

    # MaxPool2d(2,2,return_indices=True)-style flat indices into the (2H)x(2W) output
    r = jax.random.randint(ks[1], (N, Cout, H, W), 0, 2)
    s = jax.random.randint(ks[2], (N, Cout, H, W), 0, 2)
    ii = jnp.arange(H)[None, None, :, None]
    jj = jnp.arange(W)[None, None, None, :]
    indices = ((2 * ii + r) * (2 * W) + (2 * jj + s)).astype(jnp.int32)

    params = {
        'w1': (0.3 * jax.random.normal(ks[3], (Cin, red), jnp.float32)).astype(jnp.bfloat16),
        'w2': (0.3 * jax.random.normal(ks[4], (red, red, 3, 3), jnp.float32)).astype(jnp.bfloat16),
        'w3': (0.3 * jax.random.normal(ks[5], (red, Cout), jnp.float32)).astype(jnp.bfloat16),
        'wm': (0.3 * jax.random.normal(ks[6], (Cin, Cout), jnp.float32)).astype(jnp.bfloat16),
        'bm': 0.1 * jax.random.normal(ks[7], (Cout,), jnp.float32),
        'bn1': (jax.random.uniform(ks[8], (red,), jnp.float32, 0.5, 1.5),
                0.1 * jax.random.normal(ks[9], (red,), jnp.float32),
                0.1 * jax.random.normal(ks[10], (red,), jnp.float32),
                jax.random.uniform(ks[11], (red,), jnp.float32, 0.5, 1.5)),
        'bn2': (jax.random.uniform(ks[12], (Cout,), jnp.float32, 0.5, 1.5),
                0.1 * jax.random.normal(ks[13], (Cout,), jnp.float32),
                0.1 * jax.random.normal(ks[14], (Cout,), jnp.float32),
                jax.random.uniform(ks[15], (Cout,), jnp.float32, 0.5, 1.5)),
    }

    out = jax.jit(ubneck_forward)(x, indices, params)
    out = jax.block_until_ready(out)
    assert out.shape == (N, Cout, 2 * H, 2 * W), out.shape

    ref = jax.block_until_ready(jax.jit(ref_forward)(x, indices, params))
    # Tolerance accounts for bf16 storage of x / weights / activations fed to the MXU.
    np.testing.assert_allclose(np.asarray(out.astype(jnp.float32)),
                               np.asarray(ref), rtol=5e-2, atol=5e-2)

    print("KERNEL_OK")
</pallas_src>

<mosaic_0001>
module attributes {stable_mosaic.version = 11 : i64} {
  func.func @ubneck_kernel(%arg0: i32, %arg1: memref<128x16xbf16, #tpu.memory_space<vmem>>, %arg2: memref<16x16xbf16, #tpu.memory_space<vmem>>, %arg3: memref<128x16xbf16, #tpu.memory_space<vmem>>, %arg4: memref<16x4xbf16, #tpu.memory_space<vmem>>, %arg5: memref<16x16xbf16, #tpu.memory_space<vmem>>, %arg6: memref<1x16xf32, #tpu.memory_space<vmem>>, %arg7: memref<1x4xf32, #tpu.memory_space<vmem>>, %arg8: memref<1x4xf32, #tpu.memory_space<vmem>>, %arg9: memref<16x16xbf16, #tpu.memory_space<vmem>>, %arg10: memref<1x16xf32, #tpu.memory_space<vmem>>, %arg11: memref<1x16xf32, #tpu.memory_space<vmem>>, %arg12: memref<16x64xbf16, #tpu.memory_space<vmem>>, %arg13: memref<1x64xf32, #tpu.memory_space<vmem>>, %arg14: memref<1x64xf32, #tpu.memory_space<vmem>>, %arg15: memref<128x64xbf16, #tpu.memory_space<vmem>>) attributes {dimension_semantics = [#tpu.dimension_semantics<parallel>], iteration_bounds = array<i64: 4>, scalar_prefetch = 0 : i64, scratch_operands = 0 : i64, tpu.core_type = #tpu.core_type<tc>, window_params = [{transform_indices = @transform_0, window_bounds = array<i64: 128, 16>}, {transform_indices = @transform_1, window_bounds = array<i64: 16, 16>}, {transform_indices = @transform_2, window_bounds = array<i64: 128, 16>}, {pipeline_mode = #tpu.pipeline_mode<synchronous>, transform_indices = @transform_3, window_bounds = array<i64: 16, 4>}, {pipeline_mode = #tpu.pipeline_mode<synchronous>, transform_indices = @transform_4, window_bounds = array<i64: 16, 16>}, {pipeline_mode = #tpu.pipeline_mode<synchronous>, transform_indices = @transform_5, window_bounds = array<i64: 1, 16>}, {pipeline_mode = #tpu.pipeline_mode<synchronous>, transform_indices = @transform_6, window_bounds = array<i64: 1, 4>}, {pipeline_mode = #tpu.pipeline_mode<synchronous>, transform_indices = @transform_7, window_bounds = array<i64: 1, 4>}, {pipeline_mode = #tpu.pipeline_mode<synchronous>, transform_indices = @transform_8, window_bounds = array<i64: 16, 16>}, {pipeline_mode = #tpu.pipeline_mode<synchronous>, transform_indices = @transform_9, window_bounds = array<i64: 1, 16>}, {pipeline_mode = #tpu.pipeline_mode<synchronous>, transform_indices = @transform_10, window_bounds = array<i64: 1, 16>}, {pipeline_mode = #tpu.pipeline_mode<synchronous>, transform_indices = @transform_11, window_bounds = array<i64: 16, 64>}, {pipeline_mode = #tpu.pipeline_mode<synchronous>, transform_indices = @transform_12, window_bounds = array<i64: 1, 64>}, {pipeline_mode = #tpu.pipeline_mode<synchronous>, transform_indices = @transform_13, window_bounds = array<i64: 1, 64>}, {transform_indices = @transform_14, window_bounds = array<i64: 128, 64>}]} {
    %c0 = arith.constant 0 : index
    %c0_0 = arith.constant 0 : index
    %0 = vector.load %arg1[%c0, %c0_0] : memref<128x16xbf16, #tpu.memory_space<vmem>>, vector<128x16xbf16>
    %c0_1 = arith.constant 0 : index
    %c0_2 = arith.constant 0 : index
    %1 = vector.load %arg4[%c0_1, %c0_2] : memref<16x4xbf16, #tpu.memory_space<vmem>>, vector<16x4xbf16>
    %cst = arith.constant dense<0.000000e+00> : vector<128x4xf32>
    %2 = tpu.matmul %0, %1, %cst {dimension_numbers = #tpu.dot_dimension_numbers<[1], [0], [0], [1], [0, 0, 1, 1], [], []>} : vector<128x16xbf16>, vector<16x4xbf16>, vector<128x4xf32> -> vector<128x4xf32>
    %c0_3 = arith.constant 0 : index
    %c0_4 = arith.constant 0 : index
    %3 = vector.load %arg7[%c0_3, %c0_4] : memref<1x4xf32, #tpu.memory_space<vmem>>, vector<1x4xf32>
    %4 = vector.broadcast %3 : vector<1x4xf32> to vector<128x4xf32>
    %5 = arith.mulf %2, %4 : vector<128x4xf32>
    %c0_5 = arith.constant 0 : index
    %c0_6 = arith.constant 0 : index
    %6 = vector.load %arg8[%c0_5, %c0_6] : memref<1x4xf32, #tpu.memory_space<vmem>>, vector<1x4xf32>
    %7 = vector.broadcast %6 : vector<1x4xf32> to vector<128x4xf32>
    %8 = arith.addf %5, %7 : vector<128x4xf32>
    %cst_7 = arith.constant 0.000000e+00 : f32
    %9 = vector.broadcast %cst_7 : f32 to vector<128x4xf32>
    %10 = arith.cmpf oge, %8, %9 : vector<128x4xf32>
    %cst_8 = arith.constant 2.500000e-01 : f32
    %11 = vector.broadcast %cst_8 : f32 to vector<128x4xf32>
    %12 = arith.mulf %11, %8 : vector<128x4xf32>
    %13 = arith.select %10, %8, %12 : vector<128x4xi1>, vector<128x4xf32>
    %c0_9 = arith.constant 0 : index
    %c0_10 = arith.constant 0 : index
    %14 = vector.load %arg5[%c0_9, %c0_10] : memref<16x16xbf16, #tpu.memory_space<vmem>>, vector<16x16xbf16>
    %cst_11 = arith.constant dense<0.000000e+00> : vector<128x16xf32>
    %15 = tpu.matmul %0, %14, %cst_11 {dimension_numbers = #tpu.dot_dimension_numbers<[1], [0], [0], [1], [0, 0, 1, 1], [], []>} : vector<128x16xbf16>, vector<16x16xbf16>, vector<128x16xf32> -> vector<128x16xf32>
    %c0_12 = arith.constant 0 : index
    %c0_13 = arith.constant 0 : index
    %16 = vector.load %arg6[%c0_12, %c0_13] : memref<1x16xf32, #tpu.memory_space<vmem>>, vector<1x16xf32>
    %17 = vector.broadcast %16 : vector<1x16xf32> to vector<128x16xf32>
    %18 = arith.addf %15, %17 : vector<128x16xf32>
    %c0_14 = arith.constant 0 : index
    %c0_15 = arith.constant 0 : index
    %19 = vector.load %arg2[%c0_14, %c0_15] : memref<16x16xbf16, #tpu.memory_space<vmem>>, vector<16x16xbf16>
    %c0_16 = arith.constant 0 : index
    %c0_17 = arith.constant 0 : index
    %20 = vector.load %arg4[%c0_16, %c0_17] : memref<16x4xbf16, #tpu.memory_space<vmem>>, vector<16x4xbf16>
    %cst_18 = arith.constant dense<0.000000e+00> : vector<16x4xf32>
    %21 = tpu.matmul %19, %20, %cst_18 {dimension_numbers = #tpu.dot_dimension_numbers<[1], [0], [0], [1], [0, 0, 1, 1], [], []>} : vector<16x16xbf16>, vector<16x4xbf16>, vector<16x4xf32> -> vector<16x4xf32>
    %c0_19 = arith.constant 0 : index
    %c0_20 = arith.constant 0 : index
    %22 = vector.load %arg7[%c0_19, %c0_20] : memref<1x4xf32, #tpu.memory_space<vmem>>, vector<1x4xf32>
    %23 = vector.broadcast %22 : vector<1x4xf32> to vector<16x4xf32>
    %24 = arith.mulf %21, %23 : vector<16x4xf32>
    %c0_21 = arith.constant 0 : index
    %c0_22 = arith.constant 0 : index
    %25 = vector.load %arg8[%c0_21, %c0_22] : memref<1x4xf32, #tpu.memory_space<vmem>>, vector<1x4xf32>
    %26 = vector.broadcast %25 : vector<1x4xf32> to vector<16x4xf32>
    %27 = arith.addf %24, %26 : vector<16x4xf32>
    %cst_23 = arith.constant 0.000000e+00 : f32
    %28 = vector.broadcast %cst_23 : f32 to vector<16x4xf32>
    %29 = arith.cmpf oge, %27, %28 : vector<16x4xf32>
    %cst_24 = arith.constant 2.500000e-01 : f32
    %30 = vector.broadcast %cst_24 : f32 to vector<16x4xf32>
    %31 = arith.mulf %30, %27 : vector<16x4xf32>
    %32 = arith.select %29, %27, %31 : vector<16x4xi1>, vector<16x4xf32>
    %c2_i32 = arith.constant 2 : i32
    %c0_i32 = arith.constant 0 : i32
    %33 = arith.cmpi eq, %c2_i32, %c0_i32 : i32
    %c1_i32 = arith.constant 1 : i32
    %34 = arith.select %33, %c1_i32, %c2_i32 : i32
    %35 = arith.remsi %arg0, %34 : i32
    %c0_i32_25 = arith.constant 0 : i32
    %36 = arith.cmpi ne, %35, %c0_i32_25 : i32
    %c0_i32_26 = arith.constant 0 : i32
    %37 = arith.cmpi slt, %35, %c0_i32_26 : i32
    %c0_i32_27 = arith.constant 0 : i32
    %38 = arith.cmpi slt, %34, %c0_i32_27 : i32
    %39 = arith.xori %37, %38 : i1
    %40 = arith.andi %39, %36 : i1
    %41 = arith.addi %35, %34 : i32
    %42 = arith.select %40, %41, %35 : i32
    %c1_i32_28 = arith.constant 1 : i32
    %43 = arith.cmpi eq, %42, %c1_i32_28 : i32
    %cst_29 = arith.constant 0.000000e+00 : f32
    %cst_30 = arith.constant 1.000000e+00 : f32
    %44 = arith.select %43, %cst_29, %cst_30 : f32
    %45 = vector.broadcast %44 : f32 to vector<16x4xf32>
    %46 = arith.mulf %32, %45 : vector<16x4xf32>
    %cst_31 = arith.constant 0.000000e+00 : f32
    %47 = vector.broadcast %cst_31 : f32 to vector<1x4xf32>
    %48 = tpu.concatenate %13, %46, %47 in 0 : vector<128x4xf32>, vector<16x4xf32>, vector<1x4xf32> -> vector<145x4xf32>
    %49 = tpu.iota {dimensions = array<i32: 0>} : vector<128x4xi32>
    %c16_i32 = arith.constant 16 : i32
    %c0_i32_32 = arith.constant 0 : i32
    %50 = arith.cmpi eq, %c16_i32, %c0_i32_32 : i32
    %c1_i32_33 = arith.constant 1 : i32
    %51 = arith.select %50, %c1_i32_33, %c16_i32 : i32
    %52 = vector.broadcast %51 : i32 to vector<128x4xi32>
    %53 = arith.remsi %49, %52 : vector<128x4xi32>
    %c0_i32_34 = arith.constant 0 : i32
    %54 = vector.broadcast %c0_i32_34 : i32 to vector<128x4xi32>
    %55 = arith.cmpi ne, %53, %54 : vector<128x4xi32>
    %c0_i32_35 = arith.constant 0 : i32
    %56 = vector.broadcast %c0_i32_35 : i32 to vector<128x4xi32>
    %57 = arith.cmpi slt, %53, %56 : vector<128x4xi32>
    %c0_i32_36 = arith.constant 0 : i32
    %58 = arith.cmpi slt, %51, %c0_i32_36 : i32
    %59 = vector.broadcast %58 : i1 to vector<128x4xi1>
    %60 = vector.broadcast %59 : vector<128x4xi1> to vector<128x4xi1>
    %61 = arith.xori %57, %60 : vector<128x4xi1>
    %62 = arith.andi %61, %55 : vector<128x4xi1>
    %63 = vector.broadcast %51 : i32 to vector<128x4xi32>
    %64 = arith.addi %53, %63 : vector<128x4xi32>
    %65 = arith.select %62, %64, %53 : vector<128x4xi1>, vector<128x4xi32>
    %c15_i32 = arith.constant 15 : i32
    %66 = vector.broadcast %c15_i32 : i32 to vector<128x4xi32>
    %67 = arith.cmpi eq, %65, %66 : vector<128x4xi32>
    %68 = vector.extract_strided_slice %48 {offsets = [1, 0], sizes = [128, 4], strides = [1, 1]} : vector<145x4xf32> to vector<128x4xf32>
    %cst_37 = arith.constant 0.000000e+00 : f32
    %69 = vector.broadcast %cst_37 : f32 to vector<128x4xf32>
    %70 = arith.select %67, %69, %68 : vector<128x4xi1>, vector<128x4xf32>
    %71 = vector.extract_strided_slice %48 {offsets = [16, 0], sizes = [128, 4], strides = [1, 1]} : vector<145x4xf32> to vector<128x4xf32>
    %72 = vector.extract_strided_slice %48 {offsets = [17, 0], sizes = [128, 4], strides = [1, 1]} : vector<145x4xf32> to vector<128x4xf32>
    %cst_38 = arith.constant 0.000000e+00 : f32
    %73 = vector.broadcast %cst_38 : f32 to vector<128x4xf32>
    %74 = arith.select %67, %73, %72 : vector<128x4xi1>, vector<128x4xf32>
    %75 = tpu.concatenate %13, %70, %71, %74 in 1 : vector<128x4xf32>, vector<128x4xf32>, vector<128x4xf32>, vector<128x4xf32> -> vector<128x16xf32>
    %76 = arith.truncf %75 : vector<128x16xf32> to vector<128x16xbf16>
    %c0_39 = arith.constant 0 : index
    %c0_40 = arith.constant 0 : index
    %77 = vector.load %arg9[%c0_39, %c0_40] : memref<16x16xbf16, #tpu.memory_space<vmem>>, vector<16x16xbf16>
    %cst_41 = arith.constant dense<0.000000e+00> : vector<128x16xf32>
    %78 = tpu.matmul %76, %77, %cst_41 {dimension_numbers = #tpu.dot_dimension_numbers<[1], [0], [0], [1], [0, 0, 1, 1], [], []>} : vector<128x16xbf16>, vector<16x16xbf16>, vector<128x16xf32> -> vector<128x16xf32>
    %c0_42 = arith.constant 0 : index
    %c0_43 = arith.constant 0 : index
    %79 = vector.load %arg10[%c0_42, %c0_43] : memref<1x16xf32, #tpu.memory_space<vmem>>, vector<1x16xf32>
    %80 = vector.broadcast %79 : vector<1x16xf32> to vector<128x16xf32>
    %81 = arith.mulf %78, %80 : vector<128x16xf32>
    %c0_44 = arith.constant 0 : index
    %c0_45 = arith.constant 0 : index
    %82 = vector.load %arg11[%c0_44, %c0_45] : memref<1x16xf32, #tpu.memory_space<vmem>>, vector<1x16xf32>
    %83 = vector.broadcast %82 : vector<1x16xf32> to vector<128x16xf32>
    %84 = arith.addf %81, %83 : vector<128x16xf32>
    %cst_46 = arith.constant 0.000000e+00 : f32
    %85 = vector.broadcast %cst_46 : f32 to vector<128x16xf32>
    %86 = arith.cmpf oge, %84, %85 : vector<128x16xf32>
    %cst_47 = arith.constant 2.500000e-01 : f32
    %87 = vector.broadcast %cst_47 : f32 to vector<128x16xf32>
    %88 = arith.mulf %87, %84 : vector<128x16xf32>
    %89 = arith.select %86, %84, %88 : vector<128x16xi1>, vector<128x16xf32>
    %90 = arith.truncf %89 : vector<128x16xf32> to vector<128x16xbf16>
    %c0_48 = arith.constant 0 : index
    %c0_49 = arith.constant 0 : index
    %91 = vector.load %arg12[%c0_48, %c0_49] : memref<16x64xbf16, #tpu.memory_space<vmem>>, vector<16x64xbf16>
    %cst_50 = arith.constant dense<0.000000e+00> : vector<128x64xf32>
    %92 = tpu.matmul %90, %91, %cst_50 {dimension_numbers = #tpu.dot_dimension_numbers<[1], [0], [0], [1], [0, 0, 1, 1], [], []>} : vector<128x16xbf16>, vector<16x64xbf16>, vector<128x64xf32> -> vector<128x64xf32>
    %c0_51 = arith.constant 0 : index
    %c0_52 = arith.constant 0 : index
    %93 = vector.load %arg13[%c0_51, %c0_52] : memref<1x64xf32, #tpu.memory_space<vmem>>, vector<1x64xf32>
    %94 = vector.broadcast %93 : vector<1x64xf32> to vector<128x64xf32>
    %95 = arith.mulf %92, %94 : vector<128x64xf32>
    %c0_53 = arith.constant 0 : index
    %c0_54 = arith.constant 0 : index
    %96 = vector.load %arg14[%c0_53, %c0_54] : memref<1x64xf32, #tpu.memory_space<vmem>>, vector<1x64xf32>
    %97 = vector.broadcast %96 : vector<1x64xf32> to vector<128x64xf32>
    %98 = arith.addf %95, %97 : vector<128x64xf32>
    %c0_55 = arith.constant 0 : index
    %c0_56 = arith.constant 0 : index
    %99 = vector.load %arg3[%c0_55, %c0_56] : memref<128x16xbf16, #tpu.memory_space<vmem>>, vector<128x16xbf16>
    %100 = arith.fptosi %99 : vector<128x16xbf16> to vector<128x16xi32>
    %c0_i32_57 = arith.constant 0 : i32
    %101 = vector.broadcast %c0_i32_57 : i32 to vector<128x16xi32>
    %102 = arith.cmpi eq, %100, %101 : vector<128x16xi32>
    %cst_58 = arith.constant 0.000000e+00 : f32
    %103 = vector.broadcast %cst_58 : f32 to vector<128x16xf32>
    %104 = arith.select %102, %18, %103 : vector<128x16xi1>, vector<128x16xf32>
    %c1_i32_59 = arith.constant 1 : i32
    %105 = vector.broadcast %c1_i32_59 : i32 to vector<128x16xi32>
    %106 = arith.cmpi eq, %100, %105 : vector<128x16xi32>
    %cst_60 = arith.constant 0.000000e+00 : f32
    %107 = vector.broadcast %cst_60 : f32 to vector<128x16xf32>
    %108 = arith.select %106, %18, %107 : vector<128x16xi1>, vector<128x16xf32>
    %c2_i32_61 = arith.constant 2 : i32
    %109 = vector.broadcast %c2_i32_61 : i32 to vector<128x16xi32>
    %110 = arith.cmpi eq, %100, %109 : vector<128x16xi32>
    %cst_62 = arith.constant 0.000000e+00 : f32
    %111 = vector.broadcast %cst_62 : f32 to vector<128x16xf32>
    %112 = arith.select %110, %18, %111 : vector<128x16xi1>, vector<128x16xf32>
    %c3_i32 = arith.constant 3 : i32
    %113 = vector.broadcast %c3_i32 : i32 to vector<128x16xi32>
    %114 = arith.cmpi eq, %100, %113 : vector<128x16xi32>
    %cst_63 = arith.constant 0.000000e+00 : f32
    %115 = vector.broadcast %cst_63 : f32 to vector<128x16xf32>
    %116 = arith.select %114, %18, %115 : vector<128x16xi1>, vector<128x16xf32>
    %117 = tpu.concatenate %104, %108, %112, %116 in 1 : vector<128x16xf32>, vector<128x16xf32>, vector<128x16xf32>, vector<128x16xf32> -> vector<128x64xf32>
    %118 = arith.addf %98, %117 : vector<128x64xf32>
    %cst_64 = arith.constant 0.000000e+00 : f32
    %119 = vector.broadcast %cst_64 : f32 to vector<128x64xf32>
    %120 = arith.cmpf oge, %118, %119 : vector<128x64xf32>
    %cst_65 = arith.constant 2.500000e-01 : f32
    %121 = vector.broadcast %cst_65 : f32 to vector<128x64xf32>
    %122 = arith.mulf %121, %118 : vector<128x64xf32>
    %123 = arith.select %120, %118, %122 : vector<128x64xi1>, vector<128x64xf32>
    %124 = arith.truncf %123 : vector<128x64xf32> to vector<128x64xbf16>
    %c0_66 = arith.constant 0 : index
    %c0_67 = arith.constant 0 : index
    %125 = vector.load %arg15[%c0_66, %c0_67] : memref<128x64xbf16, #tpu.memory_space<vmem>>, vector<128x64xbf16>
    tpu.vector_store %arg15[%c0_66, %c0_67], %124 {strides = array<i32>} : memref<128x64xbf16, #tpu.memory_space<vmem>>, vector<128x64xbf16>,
    return
  }
  func.func @transform_0(%arg0: i32) -> (i32, i32) {
    %c0_i32 = arith.constant 0 : i32
    %c0_i32_0 = arith.constant 0 : i32
    return %arg0, %c0_i32 : i32, i32
  }
  func.func @transform_1(%arg0: i32) -> (i32, i32) {
    %c1_i32 = arith.constant 1 : i32
    %0 = arith.addi %arg0, %c1_i32 : i32
    %c8_i32 = arith.constant 8 : i32
    %1 = arith.muli %0, %c8_i32 : i32
    %c31_i32 = arith.constant 31 : i32
    %2 = arith.minsi %1, %c31_i32 : i32
    %c0_i32 = arith.constant 0 : i32
    %c0_i32_0 = arith.constant 0 : i32
    return %2, %c0_i32 : i32, i32
  }
  func.func @transform_2(%arg0: i32) -> (i32, i32) {
    %c0_i32 = arith.constant 0 : i32
    %c0_i32_0 = arith.constant 0 : i32
    return %arg0, %c0_i32 : i32, i32
  }
  func.func @transform_3(%arg0: i32) -> (i32, i32) {
    %c0_i32 = arith.constant 0 : i32
    %c0_i32_0 = arith.constant 0 : i32
    %c0_i32_1 = arith.constant 0 : i32
    return %c0_i32, %c0_i32_0 : i32, i32
  }
  func.func @transform_4(%arg0: i32) -> (i32, i32) {
    %c0_i32 = arith.constant 0 : i32
    %c0_i32_0 = arith.constant 0 : i32
    %c0_i32_1 = arith.constant 0 : i32
    return %c0_i32, %c0_i32_0 : i32, i32
  }
  func.func @transform_5(%arg0: i32) -> (i32, i32) {
    %c0_i32 = arith.constant 0 : i32
    %c0_i32_0 = arith.constant 0 : i32
    %c0_i32_1 = arith.constant 0 : i32
    return %c0_i32, %c0_i32_0 : i32, i32
  }
  func.func @transform_6(%arg0: i32) -> (i32, i32) {
    %c0_i32 = arith.constant 0 : i32
    %c0_i32_0 = arith.constant 0 : i32
    %c0_i32_1 = arith.constant 0 : i32
    return %c0_i32, %c0_i32_0 : i32, i32
  }
  func.func @transform_7(%arg0: i32) -> (i32, i32) {
    %c0_i32 = arith.constant 0 : i32
    %c0_i32_0 = arith.constant 0 : i32
    %c0_i32_1 = arith.constant 0 : i32
    return %c0_i32, %c0_i32_0 : i32, i32
  }
  func.func @transform_8(%arg0: i32) -> (i32, i32) {
    %c0_i32 = arith.constant 0 : i32
    %c0_i32_0 = arith.constant 0 : i32
    %c0_i32_1 = arith.constant 0 : i32
    return %c0_i32, %c0_i32_0 : i32, i32
  }
  func.func @transform_9(%arg0: i32) -> (i32, i32) {
    %c0_i32 = arith.constant 0 : i32
    %c0_i32_0 = arith.constant 0 : i32
    %c0_i32_1 = arith.constant 0 : i32
    return %c0_i32, %c0_i32_0 : i32, i32
  }
  func.func @transform_10(%arg0: i32) -> (i32, i32) {
    %c0_i32 = arith.constant 0 : i32
    %c0_i32_0 = arith.constant 0 : i32
    %c0_i32_1 = arith.constant 0 : i32
    return %c0_i32, %c0_i32_0 : i32, i32
  }
  func.func @transform_11(%arg0: i32) -> (i32, i32) {
    %c0_i32 = arith.constant 0 : i32
    %c0_i32_0 = arith.constant 0 : i32
    %c0_i32_1 = arith.constant 0 : i32
    return %c0_i32, %c0_i32_0 : i32, i32
  }
  func.func @transform_12(%arg0: i32) -> (i32, i32) {
    %c0_i32 = arith.constant 0 : i32
    %c0_i32_0 = arith.constant 0 : i32
    %c0_i32_1 = arith.constant 0 : i32
    return %c0_i32, %c0_i32_0 : i32, i32
  }
  func.func @transform_13(%arg0: i32) -> (i32, i32) {
    %c0_i32 = arith.constant 0 : i32
    %c0_i32_0 = arith.constant 0 : i32
    %c0_i32_1 = arith.constant 0 : i32
    return %c0_i32, %c0_i32_0 : i32, i32
  }
  func.func @transform_14(%arg0: i32) -> (i32, i32) {
    %c0_i32 = arith.constant 0 : i32
    %c0_i32_0 = arith.constant 0 : i32
    return %arg0, %c0_i32 : i32, i32
  }
}

</mosaic_0001>

<bundles_post_ra>
// kernel: tile.38
= control target key start
LH: loop header
LB: loop body
LE: loop exit
PB: predicated region body
PF: predicated region fallthrough
CT: control target
= control target key end

     0   :  { %s22_s0 = inlined_call_operand.vmem [shape: f32[16], index: 0, kind: input, shape index: {}]   ;;  %s23_s1 = inlined_call_operand.vmem [shape: f32[4,16], index: 1, kind: output, shape index: {}]  }
   0x1   :  { %v4_v0 = vld [vmem:[%s22_s0] ss:$0 sm:$0xff] }
   0x2   :  { %5 = vst [vmem:[%s23_s1] sm:$0xf] %v4_v0 }

// kernel: tile.39
= control target key start
LH: loop header
LB: loop body
LE: loop exit
PB: predicated region body
PF: predicated region fallthrough
CT: control target
= control target key end

     0   :  { %vm7_vm0 = vcmask 130048   ;;  %s37_s8 = smov 16   ;;  %s38_s9 = smov 32   ;;  %vm13_vm1 = vcmask 523648   ;;  %vm19_vm2 = vcmask 392448   ;;  %vm25_vm3 = vcmask 261248   ;;  %s55_s0 = inlined_call_operand.vmem [shape: f32[4,16], index: 0, kind: input, shape index: {}]   ;;  %s56_s1 = inlined_call_operand.vmem [shape: f32[1,64], index: 1, kind: output, shape index: {}]  }
   0x1   :  { %v4_v0 = vld [vmem:[%s55_s0] sm:$0xf]  ;;  %s36_s0 = smov 48  }
   0x2   :  { %5 = vst [vmem:[#allocation1] sm:$0xf] %v4_v0 }
   0x9   :  { %v10_v1 = vld [vmem:[#allocation1 + $0x3] sm:$0x1]   ;;  %v22_v2 = vld [vmem:[#allocation1 + $0x1] sm:$0x1]   ;;  %v6_v3 = vld [vmem:[#allocation1] sm:$0x1]  }
   0xa   :  { %11 = vrot.lane.b32.xlu0 %v10_v1, %s36_s0  ;;  %23 = vrot.lane.b32.xlu1 %v22_v2, %s37_s8  ;;  %v16_v4 = vld [vmem:[#allocation1 + $0x2] sm:$0x1]   ;;  %8 = vst.msk [vmem:[#allocation0] sm:$0x1] %vm7_vm0, %v6_v3  }
   0xe   :  { %17 = vrot.lane.b32.xlu0 %v16_v4, %s38_s9 }
  0x7c   :  { %v12_v5 = vpop.permute.xlu0 %11   ;;  %v24_v6 = vpop.permute.xlu1 %23  }
  0x7d   :  { %14 = vst.msk [vmem:[#allocation0] sm:$0x1] %vm13_vm1, %v12_v5  }
  0x80   :  { %v18_v7 = vpop.permute.xlu0 %17  }
  0x81   :  { %20 = vst.msk [vmem:[#allocation0] sm:$0x1] %vm19_vm2, %v18_v7  }
  0x82   :  { %26 = vst.msk [vmem:[#allocation0] sm:$0x1] %vm25_vm3, %v24_v6  }
  0x89   :  { %v30_v8 = vld [vmem:[#allocation0] sm:$0x1] }
  0x8a   :  { %32 = vst [vmem:[%s56_s1] sm:$0x1] %v30_v8 }

// kernel: tile.28
= control target key start
LH: loop header
LB: loop body
LE: loop exit
PB: predicated region body
PF: predicated region fallthrough
CT: control target
= control target key end

     0   :  { %s22_s0 = inlined_call_operand.vmem [shape: f32[4], index: 0, kind: input, shape index: {}]   ;;  %s23_s1 = inlined_call_operand.vmem [shape: f32[4,4], index: 1, kind: output, shape index: {}]  }
   0x1   :  { %v4_v0 = vld [vmem:[%s22_s0] ss:$0 sm:$0xff] }
   0x2   :  { %5 = vst [vmem:[%s23_s1] sm:$0xf] %v4_v0 }

// kernel: tile.29
= control target key start
LH: loop header
LB: loop body
LE: loop exit
PB: predicated region body
PF: predicated region fallthrough
CT: control target
= control target key end

     0   :  { %vm7_vm0 = vcmask 31744   ;;  %s37_s8 = smov 4   ;;  %s38_s9 = smov 8   ;;  %vm13_vm1 = vcmask 130144   ;;  %vm19_vm2 = vcmask 97344   ;;  %vm25_vm3 = vcmask 64544   ;;  %s55_s0 = inlined_call_operand.vmem [shape: f32[4,4], index: 0, kind: input, shape index: {}]   ;;  %s56_s1 = inlined_call_operand.vmem [shape: f32[1,16], index: 1, kind: output, shape index: {}]  }
   0x1   :  { %v4_v0 = vld [vmem:[%s55_s0] sm:$0xf]  ;;  %s36_s0 = smov 12  }
   0x2   :  { %5 = vst [vmem:[#allocation1] sm:$0xf] %v4_v0 }
   0x9   :  { %v10_v1 = vld [vmem:[#allocation1 + $0x3] sm:$0x1]   ;;  %v22_v2 = vld [vmem:[#allocation1 + $0x1] sm:$0x1]   ;;  %v6_v3 = vld [vmem:[#allocation1] sm:$0x1]  }
   0xa   :  { %11 = vrot.lane.b32.xlu0 %v10_v1, %s36_s0  ;;  %23 = vrot.lane.b32.xlu1 %v22_v2, %s37_s8  ;;  %v16_v4 = vld [vmem:[#allocation1 + $0x2] sm:$0x1]   ;;  %8 = vst.msk [vmem:[#allocation0] sm:$0x1] %vm7_vm0, %v6_v3  }
   0xe   :  { %17 = vrot.lane.b32.xlu0 %v16_v4, %s38_s9 }
  0x7c   :  { %v12_v5 = vpop.permute.xlu0 %11   ;;  %v24_v6 = vpop.permute.xlu1 %23  }
  0x7d   :  { %14 = vst.msk [vmem:[#allocation0] sm:$0x1] %vm13_vm1, %v12_v5  }
  0x80   :  { %v18_v7 = vpop.permute.xlu0 %17  }
  0x81   :  { %20 = vst.msk [vmem:[#allocation0] sm:$0x1] %vm19_vm2, %v18_v7  }
  0x82   :  { %26 = vst.msk [vmem:[#allocation0] sm:$0x1] %vm25_vm3, %v24_v6  }
  0x89   :  { %v30_v8 = vld [vmem:[#allocation0] sm:$0x1] }
  0x8a   :  { %32 = vst [vmem:[%s56_s1] sm:$0x1] %v30_v8 }

// kernel: ubneck_forward.1
= control target key start
LH: loop header
LB: loop body
LE: loop exit
PB: predicated region body
PF: predicated region fallthrough
CT: control target
= control target key end

     0   :  { %s3169_s29 = smov 0   ;;  %s4293_s0 = inlined_call_operand.vmem [shape: bf16[512,16], index: 0, kind: input, shape index: {}, may-alias: {0,1}]   ;;  %s4294_s1 = inlined_call_operand.vmem [shape: bf16[512,16], index: 1, kind: input, shape index: {}, may-alias: {0,1}]   ;;  %s4295_s2 = inlined_call_operand.vmem [shape: bf16[512,16], index: 2, kind: input, shape index: {}]   ;;  %s4296_s3 = inlined_call_operand.vmem [shape: bf16[16,4], index: 3, kind: input, shape index: {}]   ;;  %s4297_s4 = inlined_call_operand.vmem [shape: bf16[16,16], index: 4, kind: input, shape index: {}]   ;;  %s4298_s5 = inlined_call_operand.vmem [shape: f32[1,16], index: 5, kind: input, shape index: {}]   ;;  %s4299_s6 = inlined_call_operand.vmem [shape: f32[1,4], index: 6, kind: input, shape index: {}]   ;;  %s4300_s7 = inlined_call_operand.vmem [shape: f32[1,4], index: 7, kind: input, shape index: {}]   ;;  %s4301_s8 = inlined_call_operand.vmem [shape: bf16[16,16], index: 8, kind: input, shape index: {}]   ;;  %s4302_s9 = inlined_call_operand.vmem [shape: f32[1,16], index: 9, kind: input, shape index: {}]   ;;  %s4303_s10 = inlined_call_operand.vmem [shape: f32[1,16], index: 10, kind: input, shape index: {}]   ;;  %s4304_s11 = inlined_call_operand.vmem [shape: bf16[16,64], index: 11, kind: input, shape index: {}]   ;;  %s4305_s12 = inlined_call_operand.vmem [shape: f32[1,64], index: 12, kind: input, shape index: {}]   ;;  %s4306_s13 = inlined_call_operand.vmem [shape: f32[1,64], index: 13, kind: input, shape index: {}]   ;;  %s4307_s14 = inlined_call_operand.vmem [shape: bf16[512,64], index: 14, kind: output, shape index: {}]  }
   0x1 LB: > { %s3175_s30 = sadd.s32 4294967295, %s3084_s29   ;;  %p2636_p0 = scmp.ge.s32.totalorder %s3084_s29, 1  ;;  %s3084_s29 = sphi %s3169_s29, %s24_s29  }
   0x2   : > { %p451_p1 = scmp.lt.s32.totalorder %s3084_s29, 5 }
   0x4   : > { %p452_p2 = pnand %p2636_p0, %p451_p1 }
   0x6   : > { %455 = sbr.rel (%p452_p2) target bundleno = 868 (0x364), region = 76 }
   0xd   : > { %v3065_v0 = vld [vmem:[%s4296_s3] sm:$0xff]   ;;  %s2637_s17 = sshll.u32 %s3175_s30, 4  ;;  %s2724_s18 = sshll.u32 %s3175_s30, 3  ;;  %v3086_v2 = vmov 0.0   ;;  %vm608_vm0 = vcmask 130048   ;;  %vm3087_vm1 = vmmov 0   ;;  %v1014_v13 = vlaneseq }
   0xe   : > { %p512_p3 = scmp.lt.s32.totalorder %s2637_s17, 63  ;;  %v3075_v1 = vld [vmem:[%s4297_s4] sm:$0xff]   ;;  %2819 = vmatprep.subr.bf16.mxu0 %v3065_v0  ;;  %s2725_s21 = sadd.s32 8, %s2724_s18  ;;  %v3248_v37 = vrot.slane %v3086_v2, 1  ;;  %vm1256_vm5 = vcmask 1046528  }
   0xf   : > { %2820 = vmatpush3.bf16.msra.mxu0 %v3065_v0  ;;  %2837 = vmatprep.subr.bf16.mxu1 %v3075_v1  ;;  %p519_p4 = scmp.lt.s32.totalorder %s2725_s21, 31  ;;  %v3076_v12 = vld [vmem:[%s4301_s8] sm:$0xff]   ;;  %v3218_v14 = vshrl.u32 %v1014_v13, 7  ;;  %s998_s24 = ssub.s32 0, %s3175_s30 }
  0x10   : > { %s4371_s17 = smov (!%p512_p3, %s2637_s17), 63  ;;  %2855 = vmatprep.subr.bf16.mxu0 %v3086_v2  ;;  %2838 = vmatpush3.bf16.msra.mxu1 %v3075_v1  ;;  %v3223_v15 = vld [vmem:[%s4299_s6] ss:$0 sm:$0xff]  ;;  %p997_p6 = scmp.lt.s32.totalorder %s3175_s30, 0 }
  0x11   : > { %s3188_s22 = sshll.u32 %s4371_s17, 2  ;;  %s4373_s21 = smov (!%p519_p4, %s2725_s21), 31  ;;  %2861 = vmatprep.subr.bf16.mxu1 %v3076_v12  ;;  %v3228_v17 = vld [vmem:[%s4300_s7] ss:$0 sm:$0xff]  ;;  %v1016_v18 = vadd.s32 8, %v3218_v14  ;;  %v1018_v19 = vadd.s32 24, %v3218_v14 }
  0x12   : > { %s515_s25 = scalar_lea.vmem %s4293_s0, %s3188_s22  ;;  %s2640_s26 = sshll.u32 %s4373_s21, 1  ;;  %v3240_v33 = vadd.s32 40, %v3218_v14  ;;  %v3243_v34 = vadd.s32 56, %v3218_v14  ;;  %v3284_v62 = vadd.s32 72, %v3218_v14 }
  0x13   : > { %v3066_v3 = vld [vmem:[%s515_s25] sm:$0xff]   ;;  %v3067_v4 = vld [vmem:[%s515_s25 + $0x8] sm:$0xff]   ;;  %v3068_v5 = vld [vmem:[%s515_s25 + $0x10] sm:$0xff]   ;;  %p522_p5 = scmp.lt.s32.totalorder %s2640_s26, 63  ;;  %v1042_v29 = vand.u32 15, %v1016_v18  ;;  %v1056_v30 = vand.u32 15, %v1018_v19  ;;  %s3469_s20 = scalar_lea.vmem %s4295_s2, %s3188_s22 }
  0x14   : > { %2821 = vmatprep.mubr.msk.bf16.mxu0 %vm608_vm0, %v3066_v3  ;;  %2839 = vmatprep.mubr.msk.bf16.mxu1 %vm608_vm0, %v3066_v3  ;;  %v3069_v6 = vld [vmem:[%s515_s25 + $0x18] sm:$0xff]   ;;  %v3070_v7 = vld [vmem:[%s515_s25 + $0x20] sm:$0xff]   ;;  %v3071_v8 = vld [vmem:[%s515_s25 + $0x28] sm:$0xff]   ;;  %v1070_v47 = vand.u32 15, %v3240_v33  ;;  %v1084_v53 = vand.u32 15, %v3243_v34  ;;  %s3089_s15 = smov 4  }
  0x15   : > { %2822 = vmatmul.mubr.msk.bf16.vlgmr.msra.gmra.mrb[0].mxu0 %vm608_vm0, %v3067_v4  ;;  %2840 = vmatmul.mubr.msk.bf16.vlgmr.msra.gmra.mrb[0].mxu1 %vm608_vm0, %v3067_v4  ;;  %s4375_s26 = smov (!%p522_p5, %s2640_s26), 63  ;;  %v3072_v9 = vld [vmem:[%s515_s25 + $0x30] sm:$0xff]   ;;  %v3073_v10 = vld [vmem:[%s515_s25 + $0x38] sm:$0xff]   ;;  %vm3252_vm7 = vcmp.eq.s32.totalorder %v1042_v29, 15  ;;  %s3263_s25 = smin.u32 %s3175_s30, %s998_s24  ;;  %vm3270_vm8 = vcmp.eq.s32.totalorder %v1056_v30, 15  ;;  %v1098_v30 = vand.u32 15, %v3284_v62 }
  0x16   : > { %2825 = vmatprep.mubr.msk.bf16.mxu0 %vm608_vm0, %v3068_v5  ;;  %2856 = vmatpush3.bf16.msra.mxu0 %v3065_v0  ;;  %s2641_s27 = sshll.u32 %s4375_s26, 2  ;;  %s3088_s26 = smov 8   ;;  %vm3314_vm13 = vcmp.eq.s32.totalorder %v1070_v47, 15  ;;  %vm3328_vm14 = vcmp.eq.s32.totalorder %v1084_v53, 15 }
  0x17   : > { %2843 = vmatprep.mubr.msk.bf16.mxu1 %vm608_vm0, %v3068_v5  ;;  %s525_s16 = scalar_lea.vmem %s4294_s1, %s2641_s27  ;;  %2862 = vmatpush3.bf16.msra.mxu1 %v3076_v12  ;;  %s1000_s27 = sand.u32 1, %s3263_s25  }
  0x18   : > { %v3074_v11 = vld [vmem:[%s525_s16] sm:$0xff]   ;;  %s1001_s28 = ssub.s32 0, %s1000_s27  ;;  %s3090_s16 = smov 12  }
  0x19   : > { %s4377_s28 = smov (!%p997_p6, %s1001_s28), %s1000_s27  ;;  %s3091_s24 = smov 16  }
  0x1a   : > { %p2679_p7 = scmp.lt.s32.totalorder %s4377_s28, 0  ;;  %s1007_s30 = sadd.s32 2, %s4377_s28 }
  0x1b   : > { %s3092_s25 = smov 32  }
  0x1c   : > { %s4379_s30 = smov (!%p2679_p7, %s1007_s30), %s4377_s28 }
  0x1d   : > { %2826 = vmatmul.mubr.msk.bf16.gmra.mrb[4].mxu0 %vm608_vm0, %v3069_v6  ;;  %2844 = vmatmul.mubr.msk.bf16.gmra.mrb[4].mxu1 %vm608_vm0, %v3069_v6  ;;  %p1009_p8 = scmp.eq.s32.totalorder %s4379_s30, 1 }
  0x1e   : > { %2829 = vmatprep.mubr.msk.bf16.mxu0 %vm608_vm0, %v3070_v7  ;;  %2847 = vmatprep.mubr.msk.bf16.mxu1 %vm608_vm0, %v3070_v7  ;;  %v3295_v7 = vadd.s32 88, %v3218_v14 }
  0x1f   : > { %s3427_s17 = scalar_select %p1009_p8, 0.0, 1.0 }
  0x20   : > { %v1112_v34 = vand.u32 15, %v3295_v7 }
  0x25   : > { %2830 = vmatmul.mubr.msk.bf16.gmra.mrb[8].mxu0 %vm608_vm0, %v3071_v8  ;;  %2848 = vmatmul.mubr.msk.bf16.gmra.mrb[8].mxu1 %vm608_vm0, %v3071_v8 }
  0x26   : > { %2833 = vmatprep.mubr.msk.bf16.mxu0 %vm608_vm0, %v3072_v9  ;;  %2851 = vmatprep.mubr.msk.bf16.mxu1 %vm608_vm0, %v3072_v9 }
  0x2d   : > { %2834 = vmatmul.mubr.msk.bf16.gmra.mrb[12].mxu0 %vm608_vm0, %v3073_v10  ;;  %2852 = vmatmul.mubr.msk.bf16.gmra.mrb[12].mxu1 %vm608_vm0, %v3073_v10 }
  0x2e   : > { %2857 = vmatprep.mubr.msk.bf16.mxu0 %vm3087_vm1, %v3086_v2 }
  0x35   : > { %2858 = vmatmul.mubr.msk.bf16.vlgmr.msra.gmra.mrb[16].mxu0 %vm608_vm0, %v3074_v11 }
  0xe8   : > { %v2823_v16 = vpop.f32.mrb[0].mxu0 }
  0xe9   : > { %v739_v20 = vmul.f32 %v2823_v16, %v3223_v15  ;;  %v667_v21 = vpop.f32.mrb[1].mxu0 }
  0xea   : > { %v737_v22 = vmul.f32 %v3223_v15, %v667_v21  ;;  %v2824_v23 = vpop.f32.mrb[2].mxu0 }
  0xeb   : > { %v762_v24 = vadd.f32 %v3228_v17, %v739_v20  ;;  %v740_v25 = vmul.f32 %v2824_v23, %v3223_v15  ;;  %v670_v26 = vpop.f32.mrb[3].mxu0 }
  0xec   : > { %v760_v27 = vadd.f32 %v3228_v17, %v737_v22  ;;  %v738_v28 = vmul.f32 %v3223_v15, %v670_v26 }
  0xed   : > { %v794_v31 = vmul.f32 0.25, %v762_v24  ;;  %v763_v32 = vadd.f32 %v3228_v17, %v740_v25  ;;  %vm778_vm3 = vcmp.ge.f32.partialorder %v762_v24, 0.0 }
  0xee   : > { %vm776_vm2 = vcmp.ge.f32.partialorder %v760_v27, 0.0  ;;  %v792_v35 = vmul.f32 0.25, %v760_v27  ;;  %v761_v36 = vadd.f32 %v3228_v17, %v738_v28 }
  0xef   : > { %v795_v38 = vmul.f32 0.25, %v763_v32  ;;  %vm779_vm4 = vcmp.ge.f32.partialorder %v763_v32, 0.0  ;;  %v3257_v45 = vsel %vm778_vm3, %v762_v24, %v794_v31 }
  0xf0   : > { %v3250_v39 = vsel %vm776_vm2, %v760_v27, %v792_v35  ;;  %vm777_vm6 = vcmp.ge.f32.partialorder %v761_v36, 0.0  ;;  %v793_v40 = vmul.f32 0.25, %v761_v36  ;;  %v2827_v41 = vpop.f32.mrb[4].mxu0  ;;  %v1260_v61 = vrot.slane %v3257_v45, 1 }
  0xf1   : > { %v743_v43 = vmul.f32 %v2827_v41, %v3223_v15  ;;  %v683_v44 = vpop.f32.mrb[5].mxu0  ;;  %v3259_v46 = vsel %vm779_vm4, %v763_v32, %v795_v38  ;;  %v1257_v57 = vrot.slane %v3250_v39, 1  ;;  %vm3381_vm4 = vcmp.eq.s32.totalorder %v1098_v30, 15 }
  0xf2   : > { %v3265_v48 = vsel %vm777_vm6, %v761_v36, %v793_v40  ;;  %v741_v49 = vmul.f32 %v3223_v15, %v683_v44  ;;  %v2828_v50 = vpop.f32.mrb[6].mxu0  ;;  %v2945_v51 = vpack.i.bf16 %v3259_v46, %v3257_v45  ;;  %v1262_v13 = vrot.slane %v3259_v46, 1 }
  0xf3   : > { %v766_v54 = vadd.f32 %v3228_v17, %v743_v43  ;;  %v744_v55 = vmul.f32 %v2828_v50, %v3223_v15  ;;  %v686_v56 = vpop.f32.mrb[7].mxu0  ;;  %v1258_v58 = vrot.slane %v3265_v48, 1 }
  0xf4   : > { %v764_v59 = vadd.f32 %v3228_v17, %v741_v49  ;;  %v742_v60 = vmul.f32 %v3223_v15, %v686_v56  ;;  %2946 = vrot.lane.b32.xlu1 %v2945_v51, %s3088_s26  ;;  %v1263_v38 = vsel %vm1256_vm5, %v1260_v61, %v1262_v13 }
  0xf5   : > { %vm782_vm9 = vcmp.ge.f32.partialorder %v766_v54, 0.0  ;;  %v798_v63 = vmul.f32 0.25, %v766_v54  ;;  %v767_v0 = vadd.f32 %v3228_v17, %v744_v55  ;;  %v1259_v1 = vsel %vm1256_vm5, %v1257_v57, %v1258_v58 }
  0xf6   : > { %vm780_vm10 = vcmp.ge.f32.partialorder %v764_v59, 0.0  ;;  %v796_v2 = vmul.f32 0.25, %v764_v59  ;;  %v765_v3 = vadd.f32 %v3228_v17, %v742_v60  ;;  %v1261_v4 = vsel %vm1256_vm5, %v1258_v58, %v1260_v61 }
  0xf7   : > { %vm783_vm11 = vcmp.ge.f32.partialorder %v767_v0, 0.0  ;;  %v799_v5 = vmul.f32 0.25, %v767_v0  ;;  %v1307_v6 = vsel %vm3252_vm7, 0.0, %v1261_v4  ;;  %v3304_v18 = vsel %vm782_vm9, %v766_v54, %v798_v63 }
  0xf8   : > { %v3299_v8 = vsel %vm780_vm10, %v764_v59, %v796_v2  ;;  %vm781_vm12 = vcmp.ge.f32.partialorder %v765_v3, 0.0  ;;  %v797_v9 = vmul.f32 0.25, %v765_v3  ;;  %v2831_v10 = vpop.f32.mrb[8].mxu0  ;;  %v2950_v11 = vpack.i.bf16 %v1307_v6, %v1259_v1 }
  0xf9   : > { %v1264_v12 = vrot.slane %v3299_v8, 1  ;;  %v699_v16 = vpop.f32.mrb[9].mxu0  ;;  %v3306_v19 = vsel %vm783_vm11, %v767_v0, %v799_v5  ;;  %v747_v25 = vmul.f32 %v2831_v10, %v3223_v15  ;;  %v1268_v36 = vrot.slane %v3304_v18, 1 }
  0xfa   : > { %2951 = vrot.lane.b32.xlu0 %v2950_v11, %s3089_s15  ;;  %v745_v20 = vmul.f32 %v3223_v15, %v699_v16  ;;  %v2832_v21 = vpop.f32.mrb[10].mxu0  ;;  %v2955_v22 = vpack.i.bf16 %v3306_v19, %v3304_v18  ;;  %v3312_v23 = vsel %vm781_vm12, %v765_v3, %v797_v9  ;;  %v1270_v44 = vrot.slane %v3306_v19, 1  ;;  %v3385_v16 = vpop.f32.mrb[0].mxu1 }
  0xfb   : > { %v1265_v26 = vsel %vm1256_vm5, %v1262_v13, %v1264_v12  ;;  %v702_v27 = vpop.f32.mrb[11].mxu0  ;;  %v2960_v28 = vpack.i.bf16 %v3312_v23, %v3299_v8  ;;  %v1266_v33 = vrot.slane %v3312_v23, 1  ;;  %v748_v35 = vmul.f32 %v2832_v21, %v3223_v15 }
  0xfc   : > { %v768_v31 = vadd.f32 %v3228_v17, %v745_v20  ;;  %v746_v32 = vmul.f32 %v3223_v15, %v702_v27  ;;  %v1309_v40 = vsel %vm3270_vm8, 0.0, %v1265_v26  ;;  %v770_v47 = vadd.f32 %v3228_v17, %v747_v25 }
  0xfd   : > { %2961 = vrot.lane.b32.xlu1 %v2960_v28, %s3088_s26  ;;  %v1331_v49 = vsel %vm3252_vm7, 0.0, %v1265_v26  ;;  %v1267_v50 = vsel %vm1256_vm5, %v1264_v12, %v1266_v33  ;;  %v1269_v51 = vsel %vm1256_vm5, %v1266_v33, %v1268_v36  ;;  %v2965_v55 = vpack.i.bf16 %v1309_v40, %v1263_v38  ;;  %v3394_v26 = vpop.f32.mrb[1].mxu1 }
  0xfe   : > { %vm784_vm15 = vcmp.ge.f32.partialorder %v768_v31, 0.0  ;;  %v800_v41 = vmul.f32 0.25, %v768_v31  ;;  %v769_v43 = vadd.f32 %v3228_v17, %v746_v32  ;;  %2956 = vrot.lane.b32.xlu0 %v2955_v22, %s3088_s26  ;;  %v1333_v56 = vsel %vm3270_vm8, 0.0, %v1269_v51  ;;  %v3408_v32 = vpop.f32.mrb[2].mxu1 }
  0xff   : > { %v771_v57 = vadd.f32 %v3228_v17, %v748_v35  ;;  %v2975_v42 = vpack.i.bf16 %v1333_v56, %v1267_v50  ;;  %v1311_v52 = vsel %vm3314_vm13, 0.0, %v1269_v51  ;;  %vm786_vm2 = vcmp.ge.f32.partialorder %v770_v47, 0.0  ;;  %v3411_v40 = vpop.f32.mrb[3].mxu1 }
 0x100   : > { %vm785_vm1 = vcmp.ge.f32.partialorder %v769_v43, 0.0  ;;  %v801_v53 = vmul.f32 0.25, %v769_v43  ;;  %v2835_v54 = vpop.f32.mrb[12].mxu0  ;;  %v3358_v60 = vsel %vm784_vm15, %v768_v31, %v800_v41  ;;  %v802_v1 = vmul.f32 0.25, %v770_v47 }
 0x101   : > { %v751_v58 = vmul.f32 %v2835_v54, %v3223_v15  ;;  %v715_v59 = vpop.f32.mrb[13].mxu0  ;;  %4324 = vst [vmem:[#allocation2_spill] sm:$0xff] %v3358_v60  ;;  %v1272_v0 = vrot.slane %v3358_v60, 1  ;;  %2976 = vrot.lane.b32.xlu1 %v2975_v42, %s3090_s16  ;;  %v2970_v3 = vpack.i.bf16 %v1331_v49, %v1263_v38  ;;  %vm787_vm3 = vcmp.ge.f32.partialorder %v771_v57, 0.0 }
 0x102   : > { %2966 = vrot.lane.b32.xlu0 %v2965_v55, %s3089_s15  ;;  %v749_v61 = vmul.f32 %v3223_v15, %v715_v59  ;;  %v2836_v62 = vpop.f32.mrb[14].mxu0  ;;  %v3362_v63 = vsel %vm785_vm1, %v769_v43, %v801_v53  ;;  %v803_v11 = vmul.f32 0.25, %v771_v57  ;;  %v2980_v12 = vpack.i.bf16 %v1311_v52, %v1267_v50 }
 0x103   : > { %4325 = vst [vmem:[#allocation3_spill] sm:$0xff] %v3362_v63  ;;  %v718_v2 = vpop.f32.mrb[15].mxu0  ;;  %v2990_v4 = vpack.i.bf16 %v3362_v63, %v3358_v60  ;;  %v774_v5 = vadd.f32 %v3228_v17, %v751_v58  ;;  %v3379_v10 = vsel %vm1256_vm5, %v1270_v44, %v1272_v0  ;;  %v1274_v22 = vrot.slane %v3362_v63, 1 }
 0x104   : > { %v772_v6 = vadd.f32 %v3228_v17, %v749_v61  ;;  %v750_v9 = vmul.f32 %v3223_v15, %v718_v2  ;;  %v1313_v25 = vsel %vm3328_vm14, 0.0, %v3379_v10  ;;  %v752_v27 = vmul.f32 %v2836_v62, %v3223_v15  ;;  %v3440_v62 = vpop.f32.mrb[4].mxu1 }
 0x105   : > { %2991 = vrot.lane.b32.xlu1 %v2990_v4, %s3088_s26  ;;  %v1271_v28 = vsel %vm1256_vm5, %v1268_v36, %v1270_v44  ;;  %v3400_v30 = vsel %vm786_vm2, %v770_v47, %v802_v1  ;;  %vm3404_vm7 = vcmp.eq.s32.totalorder %v1112_v34, 15  ;;  %vm790_vm8 = vcmp.ge.f32.partialorder %v774_v5, 0.0  ;;  %v3446_v1 = vpop.f32.mrb[5].mxu1 }
 0x106   : > { %v804_v20 = vmul.f32 0.25, %v772_v6  ;;  %v773_v21 = vadd.f32 %v3228_v17, %v750_v9  ;;  %2971 = vrot.lane.b32.xlu0 %v2970_v3, %s3090_s16  ;;  %vm788_vm6 = vcmp.ge.f32.partialorder %v772_v6, 0.0  ;;  %4328 = vst [vmem:[#allocation4_spill] sm:$0xff] %v3400_v30  ;;  %v1276_v38 = vrot.slane %v3400_v30, 1 }
 0x107   : > { %v806_v36 = vmul.f32 0.25, %v774_v5  ;;  %v2995_v43 = vpack.i.bf16 %v1313_v25, %v1271_v28  ;;  %v3415_v34 = vsel %vm787_vm3, %v771_v57, %v803_v11  ;;  %v1275_v44 = vsel %vm1256_vm5, %v1272_v0, %v1274_v22 }
 0x108   : > { %vm789_vm9 = vcmp.ge.f32.partialorder %v773_v21, 0.0  ;;  %v805_v33 = vmul.f32 0.25, %v773_v21  ;;  %v980_v35 = vpop.f32.mrb[16].mxu0  ;;  %4331 = vst [vmem:[#allocation5_spill] sm:$0xff] %v3415_v34  ;;  %v1277_v47 = vsel %vm1256_vm5, %v1274_v22, %v1276_v38  ;;  %v3421_v50 = vsel %vm788_vm6, %v772_v6, %v804_v20  ;;  %v3454_v6 = vpop.f32.mrb[6].mxu1 }
 0x109   : > { %v987_v41 = vmul.f32 %v3223_v15, %v980_v35  ;;  %v2859_v7 = vpop.f32.mrb[17].mxu0  ;;  %4332 = vst [vmem:[#allocation6_spill] sm:$0xff] %v3421_v50  ;;  %2996 = vrot.lane.b32.xlu1 %v2995_v43, %s3089_s15  ;;  %v1337_v54 = vsel %vm3328_vm14, 0.0, %v1277_v47  ;;  %v1280_v57 = vrot.slane %v3421_v50, 1  ;;  %v775_v58 = vadd.f32 %v3228_v17, %v752_v27  ;;  %v3471_v27 = vpop.f32.mrb[7].mxu1 }
 0x10a   : > { %2981 = vrot.lane.b32.xlu0 %v2980_v12, %s3089_s15  ;;  %v983_v49 = vpop.f32.mrb[18].mxu0  ;;  %v3423_v51 = vsel %vm789_vm9, %v773_v21, %v805_v33  ;;  %v2985_v42 = vpack.i.bf16 %v3415_v34, %v3400_v30  ;;  %v1278_v59 = vrot.slane %v3415_v34, 1  ;;  %v1030_v61 = vadd.s32 120, %v3218_v14 }
 0x10b   : > { %4333 = vst [vmem:[#allocation7_spill] sm:$0xff] %v3423_v51  ;;  %v989_v53 = vadd.f32 %v3228_v17, %v987_v41  ;;  %v988_v55 = vmul.f32 %v3223_v15, %v983_v49  ;;  %v2860_v56 = vpop.f32.mrb[19].mxu0  ;;  %v3005_v29 = vpack.i.bf16 %v1337_v54, %v1275_v44  ;;  %v1335_v15 = vsel %vm3314_vm13, 0.0, %v3379_v10  ;;  %v2743_v49 = vld [vmem:[%s3469_s20] sm:$0xff]  }
 0x10c   : > { %v1282_v2 = vrot.slane %v3423_v51, 1  ;;  %v3451_v3 = vsel %vm790_vm8, %v774_v5, %v806_v36  ;;  %v1011_v4 = vstv %s3427_s17  ;;  %v1281_v24 = vsel %vm1256_vm5, %v1278_v59, %v1280_v57 }
 0x10d   : > { %v993_v0 = vmul.f32 0.25, %v989_v53  ;;  %v990_v52 = vadd.f32 %v3228_v17, %v988_v55  ;;  %vm991_vm10 = vcmp.ge.f32.partialorder %v989_v53, 0.0  ;;  %4334 = vst [vmem:[#allocation8_spill] sm:$0xff] %v3451_v3  ;;  %3006 = vrot.lane.b32.xlu1 %v3005_v29, %s3090_s16  ;;  %v1284_v9 = vrot.slane %v3451_v3, 1 }
 0x10e   : > { %2986 = vrot.lane.b32.xlu0 %v2985_v42, %s3088_s26  ;;  %v3000_v10 = vpack.i.bf16 %v1335_v15, %v1271_v28  ;;  %v1315_v11 = vsel %vm3381_vm4, 0.0, %v1277_v47  ;;  %v1028_v12 = vadd.s32 104, %v3218_v14  ;;  %v1140_v5 = vand.u32 15, %v1030_v61  ;;  %v2774_v15 = vld [vmem:[%s3469_s20 + $0x8] sm:$0xff]  }
 0x10f   : > { %vm992_vm11 = vcmp.ge.f32.partialorder %v990_v52, 0.0  ;;  %v994_v17 = vmul.f32 0.25, %v990_v52  ;;  %v807_v20 = vmul.f32 0.25, %v775_v58  ;;  %v3020_v21 = vpack.i.bf16 %v3423_v51, %v3421_v50 }
 0x110   : > { %v995_v22 = vsel %vm991_vm10, %v989_v53, %v993_v0  ;;  %vm791_vm12 = vcmp.ge.f32.partialorder %v775_v58, 0.0  ;;  %v1317_v14 = vsel %vm3404_vm7, 0.0, %v1281_v24  ;;  %v3010_v35 = vpack.i.bf16 %v1315_v11, %v1275_v44  ;;  %v3482_v53 = vpop.f32.mrb[8].mxu1 }
 0x111   : > { %v996_v25 = vsel %vm992_vm11, %v990_v52, %v994_v17  ;;  %v1012_v28 = vmul.f32 %v1011_v4, %v995_v22  ;;  %3021 = vrot.lane.b32.xlu1 %v3020_v21, %s3088_s26  ;;  %v1285_v36 = vsel %vm1256_vm5, %v1282_v2, %v1284_v9  ;;  %v1279_v41 = vsel %vm1256_vm5, %v1276_v38, %v1278_v59  ;;  %v3490_v44 = vpop.f32.mrb[9].mxu1 }
 0x112   : > { %3001 = vrot.lane.b32.xlu0 %v3000_v10, %s3090_s16  ;;  %v1013_v33 = vmul.f32 %v1011_v4, %v996_v25  ;;  %v3025_v54 = vpack.i.bf16 %v1317_v14, %v1279_v41  ;;  %v3484_v55 = vsel %vm791_vm12, %v775_v58, %v807_v20  ;;  %v1126_v56 = vand.u32 15, %v1028_v12  ;;  %v3499_v0 = vpop.f32.mrb[10].mxu1  ;;  %v2775_v20 = vld [vmem:[%s3469_s20 + $0x10] sm:$0xff]  }
 0x113   : > { %v1288_v43 = vrot.slane %v1012_v28, 1  ;;  %4335 = vst [vmem:[#allocation9_spill] sm:$0xff] %v3484_v55  ;;  %vm3486_vm13 = vcmp.eq.s32.totalorder %v1140_v5, 15  ;;  %v1283_v38 = vsel %vm1256_vm5, %v1280_v57, %v1282_v2  ;;  %v1341_v59 = vsel %vm3404_vm7, 0.0, %v1285_v36  ;;  %v3509_v2 = vpop.f32.mrb[11].mxu1 }
 0x114   : > { %v3045_v7 = vpack.i.bf16 %v1013_v33, %v1012_v28  ;;  %v1324_v47 = vrot.slane %v1013_v33, 1  ;;  %v2744_v52 = vunpack.c.l.bf16 %v2743_v49  ;;  %v3015_v57 = vpack.i.bf16 %v3484_v55, %v3451_v3  ;;  %v3524_v28 = vpop.f32.mrb[12].mxu1 }
 0x115   : > { %3026 = vrot.lane.b32.xlu1 %v3025_v54, %s3089_s15  ;;  %v1286_v4 = vrot.slane %v3484_v55, 1  ;;  %v1339_v17 = vsel %vm3381_vm4, 0.0, %v1281_v24  ;;  %v2745_v10 = vunpack.c.h.bf16 %v2743_v49  ;;  %vm3515_vm14 = vcmp.eq.s32.totalorder %v1126_v56, 15  ;;  %v2776_v49 = vld [vmem:[%s3469_s20 + $0x18] sm:$0xff]  }
 0x116   : > { %3011 = vrot.lane.b32.xlu0 %v3010_v35, %s3089_s15  ;;  %v1325_v61 = vsel %vm1256_vm5, %v1288_v43, %v1324_v47  ;;  %v1327_v58 = vsel %vm1256_vm5, %v1324_v47, %v3248_v37  ;;  %v3035_v37 = vpack.i.bf16 %v1341_v59, %v1283_v38  ;;  %v2897_v12 = vtrunc.f32 %v2744_v52  ;;  %v3532_v35 = vld [vmem:[%s4298_s5] ss:$0 sm:$0xff]  ;;  %v3536_v47 = vpop.f32.mrb[13].mxu1 }
 0x117   : > { %v1345_v29 = vsel %vm3486_vm13, 0.0, %v1327_v58  ;;  %v2748_v5 = vunpack.c.l.bf16 %v2774_v15  ;;  %v1289_v21 = vsel %vm1256_vm5, %v1286_v4, %v1288_v43  ;;  %v3030_v22 = vpack.i.bf16 %v1339_v17, %v1279_v41  ;;  %v3543_v54 = vpop.f32.mrb[14].mxu1  ;;  %v2777_v17 = vld [vmem:[%s3469_s20 + $0x20] sm:$0xff]  }
 0x118   : > { %v3507_v31 = vpack.i.bf16 %v1345_v29, %v1325_v61  ;;  %v2749_v25 = vunpack.c.h.bf16 %v2774_v15  ;;  %v1319_v13 = vsel %vm3515_vm14, 0.0, %v1285_v36  ;;  %v2899_v24 = vtrunc.f32 %v2745_v10  ;;  %v3547_v58 = vpop.f32.mrb[15].mxu1 }
 0x119   : > { %3036 = vrot.lane.b32.xlu1 %v3035_v37, %s3090_s16  ;;  %v2752_v14 = vunpack.c.l.bf16 %v2775_v20  ;;  %v1321_v33 = vsel %vm3486_vm13, 0.0, %v1289_v21  ;;  %v3534_v43 = vcvt.f32.s32 %v2897_v12  ;;  %v2901_v41 = vtrunc.f32 %v2748_v5  ;;  %v2778_v5 = vld [vmem:[%s3469_s20 + $0x28] sm:$0xff]  }
 0x11a   : > { %3016 = vrot.lane.b32.xlu0 %v3015_v57, %s3088_s26  ;;  %v1287_v36 = vsel %vm1256_vm5, %v1284_v9, %v1286_v4  ;;  %v3040_v56 = vpack.i.bf16 %v1319_v13, %v1283_v38  ;;  %v1343_v42 = vsel %vm3515_vm14, 0.0, %v1289_v21  ;;  %v2903_v59 = vtrunc.f32 %v2749_v25  ;;  %v2780_v25 = vld [vmem:[%s3469_s20 + $0x38] sm:$0xff]  }
 0x11b   : > { %v2753_v61 = vunpack.c.h.bf16 %v2775_v20  ;;  %v3050_v29 = vpack.i.bf16 %v1321_v33, %v1287_v36  ;;  %v3553_v52 = vcvt.f32.s32 %v2899_v24  ;;  %v2905_v9 = vtrunc.f32 %v2752_v14 }
 0x11c   : > { %v3558_v38 = vadd.f32 %v3385_v16, %v3532_v35  ;;  %vm2067_vm5 = vcmp.eq.s32.totalorder %v3534_v43, 1  ;;  %v3561_v15 = vcvt.f32.s32 %v2901_v41  ;;  %v2756_v57 = vunpack.c.l.bf16 %v2776_v49 }
 0x11d   : > { %3046 = vrot.lane.b32.xlu1 %v3045_v7, %s3088_s26  ;;  %v3551_v7 = vadd.f32 %v3532_v35, %v3394_v26  ;;  %v3055_v26 = vpack.i.bf16 %v1343_v42, %v1287_v36  ;;  %v3566_v4 = vadd.f32 %v3408_v32, %v3532_v35  ;;  %v3570_v37 = vadd.f32 %v3532_v35, %v3411_v40  ;;  %v2779_v40 = vld [vmem:[%s3469_s20 + $0x30] sm:$0xff]   ;;  %s3093_s26 = smov 48  }
 0x11e   : > { %3031 = vrot.lane.b32.xlu0 %v3030_v22, %s3090_s16  ;;  %v3574_v16 = vadd.f32 %v3440_v62, %v3532_v35  ;;  %v3579_v10 = vadd.f32 %v3532_v35, %v3446_v1  ;;  %v3583_v11 = vadd.f32 %v3454_v6, %v3532_v35  ;;  %v3585_v32 = vcvt.f32.s32 %v2903_v59 }
 0x11f   : > { %v2907_v12 = vtrunc.f32 %v2753_v61  ;;  %v2083_v20 = vsel %vm2067_vm5, %v3551_v7, 0.0  ;;  %vm2068_vm15 = vcmp.eq.s32.totalorder %v3553_v52, 1  ;;  %v3591_v62 = vcvt.f32.s32 %v2905_v9 }
 0x120   : > { %v2757_v21 = vunpack.c.h.bf16 %v2776_v49  ;;  %vm2069_vm1 = vcmp.eq.s32.totalorder %v3561_v15, 1  ;;  %v2909_v1 = vtrunc.f32 %v2756_v57  ;;  %v2760_v22 = vunpack.c.l.bf16 %v2777_v17 }
 0x121   : > { %3051 = vrot.lane.b32.xlu1 %v3050_v29, %s3089_s15  ;;  %v2761_v6 = vunpack.c.h.bf16 %v2777_v17  ;;  %v2764_v13 = vunpack.c.l.bf16 %v2778_v5  ;;  %v2765_v24 = vunpack.c.h.bf16 %v2778_v5  ;;  %v2768_v14 = vunpack.c.l.bf16 %v2779_v40 }
 0x122   : > { %3041 = vrot.lane.b32.xlu0 %v3040_v56, %s3089_s15  ;;  %v2769_v33 = vunpack.c.h.bf16 %v2779_v40  ;;  %v2084_v41 = vsel %vm2068_vm15, %v3570_v37, 0.0  ;;  %v3601_v36 = vadd.f32 %v3532_v35, %v3471_v27  ;;  %vm2070_vm2 = vcmp.eq.s32.totalorder %v3585_v32, 1 }
 0x123   : > { %v3604_v49 = vcvt.f32.s32 %v2907_v12  ;;  %v2085_v56 = vsel %vm2069_vm1, %v3558_v38, 0.0  ;;  %v2911_v42 = vtrunc.f32 %v2757_v21  ;;  %v2772_v59 = vunpack.c.l.bf16 %v2780_v25 }
 0x124   : > { %v2773_v61 = vunpack.c.h.bf16 %v2780_v25  ;;  %vm2071_vm3 = vcmp.eq.s32.totalorder %v3591_v62, 1  ;;  %v2913_v29 = vtrunc.f32 %v2760_v22  ;;  %v2915_v9 = vtrunc.f32 %v2761_v6 }
 0x125   : > { %3061 = vrot.lane.b32.xlu1 %v3507_v31, %s3090_s16  ;;  %v3609_v31 = vcvt.f32.s32 %v2909_v1  ;;  %v2917_v27 = vtrunc.f32 %v2764_v13  ;;  %v2919_v57 = vtrunc.f32 %v2765_v24  ;;  %v2923_v17 = vtrunc.f32 %v2769_v33 }
 0x126   : > { %3056 = vrot.lane.b32.xlu0 %v3055_v26, %s3090_s16  ;;  %v2921_v26 = vtrunc.f32 %v2768_v14  ;;  %v2086_v12 = vsel %vm2070_vm2, %v3566_v4, 0.0  ;;  %v3617_v5 = vadd.f32 %v3482_v53, %v3532_v35  ;;  %v2925_v40 = vtrunc.f32 %v2772_v59 }
 0x127   : > { %vm2072_vm4 = vcmp.eq.s32.totalorder %v3604_v49, 1  ;;  %v3622_v21 = vadd.f32 %v3532_v35, %v3490_v44  ;;  %v3626_v1 = vadd.f32 %v3499_v0, %v3532_v35  ;;  %v3628_v22 = vcvt.f32.s32 %v2911_v42 }
 0x128   : > { %v2087_v53 = vsel %vm2071_vm3, %v3579_v10, 0.0  ;;  %vm2073_vm6 = vcmp.eq.s32.totalorder %v3609_v31, 1  ;;  %v3635_v6 = vcvt.f32.s32 %v2913_v29  ;;  %v3637_v25 = vcvt.f32.s32 %v2915_v9 }
 0x129   : > { %2181 = vrot.lane.b32.xlu1 %v2084_v41, %s3091_s24  ;;  %v3640_v44 = vcvt.f32.s32 %v2917_v27  ;;  %v3642_v0 = vcvt.f32.s32 %v2919_v57  ;;  %v3644_v13 = vcvt.f32.s32 %v2921_v26  ;;  %v3646_v24 = vcvt.f32.s32 %v2923_v17 }
 0x12a   : > { %2179 = vrot.lane.b32.xlu0 %v2083_v20, %s3091_s24  ;;  %v2927_v20 = vtrunc.f32 %v2773_v61  ;;  %v2088_v14 = vsel %vm2072_vm4, %v3601_v36, 0.0  ;;  %v3651_v33 = vadd.f32 %v3532_v35, %v3509_v2  ;;  %v3653_v41 = vcvt.f32.s32 %v2925_v40 }
 0x12b   : > { %vm2074_vm7 = vcmp.eq.s32.totalorder %v3628_v22, 1  ;;  %v3660_v42 = vadd.f32 %v3524_v28, %v3532_v35  ;;  %v3664_v59 = vadd.f32 %v3532_v35, %v3536_v47  ;;  %v3668_v61 = vadd.f32 %v3543_v54, %v3532_v35 }
 0x12c   : > { %v2089_v2 = vsel %vm2073_vm6, %v3574_v16, 0.0  ;;  %vm2075_vm8 = vcmp.eq.s32.totalorder %v3635_v6, 1  ;;  %vm2076_vm9 = vcmp.eq.s32.totalorder %v3637_v25, 1  ;;  %v3678_v28 = vadd.f32 %v3532_v35, %v3547_v58 }
 0x12d   : > { %2185 = vrot.lane.b32.xlu1 %v2086_v12, %s3091_s24  ;;  %vm2077_vm10 = vcmp.eq.s32.totalorder %v3640_v44, 1  ;;  %vm2078_vm11 = vcmp.eq.s32.totalorder %v3642_v0, 1  ;;  %vm2079_vm12 = vcmp.eq.s32.totalorder %v3644_v13, 1  ;;  %vm2080_vm13 = vcmp.eq.s32.totalorder %v3646_v24, 1 }
 0x12e   : > { %2183 = vrot.lane.b32.xlu0 %v2085_v56, %s3091_s24  ;;  %v3655_v56 = vcvt.f32.s32 %v2927_v20  ;;  %v2090_v47 = vsel %vm2074_vm7, %v3583_v11, 0.0  ;;  %vm2081_vm14 = vcmp.eq.s32.totalorder %v3653_v41, 1  ;;  %v2091_v54 = vsel %vm2075_vm8, %v3622_v21, 0.0 }
 0x12f   : > { %v2092_v35 = vsel %vm2076_vm9, %v3651_v33, 0.0  ;;  %v2093_v58 = vsel %vm2077_vm10, %v3617_v5, 0.0  ;;  %v2094_v29 = vsel %vm2078_vm11, %v3626_v1, 0.0  ;;  %v2095_v9 = vsel %vm2079_vm12, %v3664_v59, 0.0 }
 0x130   : > { %vm2082_vm5 = vcmp.eq.s32.totalorder %v3655_v56, 1  ;;  %v2096_v27 = vsel %vm2080_vm13, %v3678_v28, 0.0  ;;  %v3697_v57 = vsel %vm2081_vm14, %v3660_v42, 0.0  ;;  %vm2131_vm15 = vcmp.eq.s32.totalorder %v3534_v43, 3 }
 0x131   : > { %2189 = vrot.lane.b32.xlu1 %v2088_v14, %s3091_s24  ;;  %v3700_v26 = vsel %vm2082_vm5, %v3668_v61, 0.0  ;;  %vm2132_vm1 = vcmp.eq.s32.totalorder %v3553_v52, 3  ;;  %v3705_v17 = vsel %vm2131_vm15, %v3551_v7, 0.0  ;;  %vm2133_vm2 = vcmp.eq.s32.totalorder %v3561_v15, 3 }
 0x132   : > { %2187 = vrot.lane.b32.xlu0 %v2087_v53, %s3091_s24  ;;  %v3708_v12 = vsel %vm2132_vm1, %v3570_v37, 0.0  ;;  %vm2134_vm3 = vcmp.eq.s32.totalorder %v3585_v32, 3  ;;  %v3713_v40 = vsel %vm2133_vm2, %v3558_v38, 0.0  ;;  %vm2135_vm4 = vcmp.eq.s32.totalorder %v3591_v62, 3 }
 0x133   : > { %v3716_v20 = vsel %vm2134_vm3, %v3566_v4, 0.0  ;;  %vm2136_vm6 = vcmp.eq.s32.totalorder %v3604_v49, 3  ;;  %v3722_v53 = vsel %vm2135_vm4, %v3579_v10, 0.0  ;;  %vm2137_vm7 = vcmp.eq.s32.totalorder %v3609_v31, 3 }
 0x134   : > { %v3725_v14 = vsel %vm2136_vm6, %v3601_v36, 0.0  ;;  %vm2138_vm8 = vcmp.eq.s32.totalorder %v3628_v22, 3  ;;  %vm2139_vm9 = vcmp.eq.s32.totalorder %v3635_v6, 3  ;;  %vm2140_vm10 = vcmp.eq.s32.totalorder %v3637_v25, 3 }
 0x135   : > { %2193 = vrot.lane.b32.xlu1 %v2090_v47, %s3091_s24  ;;  %v3734_v47 = vsel %vm2138_vm8, %v3583_v11, 0.0  ;;  %vm2099_vm11 = vcmp.eq.s32.totalorder %v3534_v43, 2  ;;  %v3743_v3 = vsel %vm2140_vm10, %v3651_v33, 0.0  ;;  %vm2141_vm12 = vcmp.eq.s32.totalorder %v3640_v44, 3 }
 0x136   : > { %2191 = vrot.lane.b32.xlu0 %v2089_v2, %s3091_s24  ;;  %v3731_v2 = vsel %vm2137_vm7, %v3574_v16, 0.0  ;;  %vm2142_vm13 = vcmp.eq.s32.totalorder %v3642_v0, 3  ;;  %vm2100_vm14 = vcmp.eq.s32.totalorder %v3553_v52, 2  ;;  %vm2143_vm5 = vcmp.eq.s32.totalorder %v3644_v13, 3 }
 0x137   : > { %v3752_v55 = vsel %vm2142_vm13, %v3626_v1, 0.0  ;;  %vm2144_vm15 = vcmp.eq.s32.totalorder %v3646_v24, 3  ;;  %v3758_v50 = vsel %vm2143_vm5, %v3664_v59, 0.0  ;;  %vm2145_vm1 = vcmp.eq.s32.totalorder %v3653_v41, 3 }
 0x138   : > { %v3761_v51 = vsel %vm2144_vm15, %v3678_v28, 0.0  ;;  %vm2146_vm2 = vcmp.eq.s32.totalorder %v3655_v56, 3  ;;  %v3767_v60 = vsel %vm2145_vm1, %v3660_v42, 0.0  ;;  %vm2035_vm3 = vcmp.eq.s32.totalorder %v3534_v43, 0 }
 0x139   : > { %2197 = vrot.lane.b32.xlu1 %v2092_v35, %s3091_s24  ;;  %v3749_v35 = vsel %vm2141_vm12, %v3617_v5, 0.0  ;;  %v3770_v63 = vsel %vm2146_vm2, %v3668_v61, 0.0  ;;  %vm2036_vm4 = vcmp.eq.s32.totalorder %v3553_v52, 0  ;;  %vm2037_vm6 = vcmp.eq.s32.totalorder %v3561_v15, 0 }
 0x13a   : > { %2195 = vrot.lane.b32.xlu0 %v2091_v54, %s3091_s24  ;;  %v3740_v54 = vsel %vm2139_vm9, %v3622_v21, 0.0  ;;  %v3778_v30 = vsel %vm2036_vm4, %v3570_v37, 0.0  ;;  %vm2038_vm7 = vcmp.eq.s32.totalorder %v3585_v32, 0  ;;  %vm2039_vm8 = vcmp.eq.s32.totalorder %v3591_v62, 0 }
 0x13b   : > { %4341 = vst [vmem:[#allocation11_spill] sm:$0xff] %v3778_v30  ;;  %v3786_v34 = vsel %vm2038_vm7, %v3566_v4, 0.0  ;;  %vm2040_vm9 = vcmp.eq.s32.totalorder %v3604_v49, 0  ;;  %vm2041_vm10 = vcmp.eq.s32.totalorder %v3609_v31, 0  ;;  %vm2042_vm12 = vcmp.eq.s32.totalorder %v3628_v22, 0 }
 0x13c   : > { %4343 = vst [vmem:[#allocation13_spill] sm:$0xff] %v3786_v34  ;;  %v3795_v30 = vsel %vm2040_vm9, %v3601_v36, 0.0  ;;  %v3801_v34 = vsel %vm2041_vm10, %v3574_v16, 0.0  ;;  %vm2043_vm13 = vcmp.eq.s32.totalorder %v3635_v6, 0  ;;  %vm2044_vm5 = vcmp.eq.s32.totalorder %v3637_v25, 0 }
 0x13d   : > { %2201 = vrot.lane.b32.xlu1 %v2094_v29, %s3091_s24  ;;  %v3783_v29 = vsel %vm2037_vm6, %v3558_v38, 0.0  ;;  %4344 = vst [vmem:[#allocation14_spill] sm:$0xff] %v3795_v30  ;;  %4345 = vst [vmem:[#allocation15_spill] sm:$0xff] %v3801_v34  ;;  %v3812_v30 = vsel %vm2044_vm5, %v3651_v33, 0.0  ;;  %vm2045_vm15 = vcmp.eq.s32.totalorder %v3640_v44, 0  ;;  %vm2046_vm1 = vcmp.eq.s32.totalorder %v3642_v0, 0 }
 0x13e   : > { %2199 = vrot.lane.b32.xlu0 %v2093_v58, %s3091_s24  ;;  %v3775_v58 = vsel %vm2035_vm3, %v3551_v7, 0.0  ;;  %4342 = vst [vmem:[#allocation12_spill] sm:$0xff] %v3783_v29  ;;  %v3804_v29 = vsel %vm2042_vm12, %v3583_v11, 0.0  ;;  %4347 = vst [vmem:[#allocation17_spill] sm:$0xff] %v3812_v30  ;;  %v3820_v34 = vsel %vm2046_vm1, %v3626_v1, 0.0  ;;  %vm2047_vm2 = vcmp.eq.s32.totalorder %v3644_v13, 0 }
 0x13f   : > { %4340 = vst [vmem:[#allocation10_spill] sm:$0xff] %v3775_v58  ;;  %v3792_v58 = vsel %vm2039_vm8, %v3579_v10, 0.0  ;;  %4349 = vst [vmem:[#allocation19_spill] sm:$0xff] %v3820_v34  ;;  %vm2048_vm3 = vcmp.eq.s32.totalorder %v3646_v24, 0  ;;  %vm2049_vm4 = vcmp.eq.s32.totalorder %v3653_v41, 0  ;;  %vm2050_vm6 = vcmp.eq.s32.totalorder %v3655_v56, 0 }
 0x140   : > { %v3830_v30 = vsel %vm2048_vm3, %v3678_v28, 0.0  ;;  %v2115_v34 = vsel %vm2099_vm11, %v3551_v7, 0.0  ;;  %vm2101_vm7 = vcmp.eq.s32.totalorder %v3561_v15, 2  ;;  %vm2102_vm8 = vcmp.eq.s32.totalorder %v3585_v32, 2 }
 0x141   : > { %2205 = vrot.lane.b32.xlu1 %v2096_v27, %s3091_s24  ;;  %v3817_v27 = vsel %vm2045_vm15, %v3617_v5, 0.0  ;;  %4350 = vst [vmem:[#allocation20_spill] sm:$0xff] %v3830_v30  ;;  %v2116_v30 = vsel %vm2100_vm14, %v3570_v37, 0.0  ;;  %v2117_v43 = vsel %vm2101_vm7, %v3558_v38, 0.0  ;;  %v2118_v7 = vsel %vm2102_vm8, %v3566_v4, 0.0 }
 0x142   : > { %2203 = vrot.lane.b32.xlu0 %v2095_v9, %s3091_s24  ;;  %v3809_v9 = vsel %vm2043_vm13, %v3622_v21, 0.0  ;;  %4348 = vst [vmem:[#allocation18_spill] sm:$0xff] %v3817_v27  ;;  %v3840_v27 = vsel %vm2049_vm4, %v3660_v42, 0.0  ;;  %vm2103_vm11 = vcmp.eq.s32.totalorder %v3591_v62, 2  ;;  %vm2104_vm9 = vcmp.eq.s32.totalorder %v3604_v49, 2 }
 0x143   : > { %4346 = vst [vmem:[#allocation16_spill] sm:$0xff] %v3809_v9  ;;  %v3827_v9 = vsel %vm2047_vm2, %v3664_v59, 0.0  ;;  %v2119_v52 = vsel %vm2103_vm11, %v3579_v10, 0.0  ;;  %v2120_v15 = vsel %vm2104_vm9, %v3601_v36, 0.0  ;;  %vm2105_vm14 = vcmp.eq.s32.totalorder %v3609_v31, 2 }
 0x144   : > { %vm2106_vm10 = vcmp.eq.s32.totalorder %v3628_v22, 2  ;;  %vm2107_vm12 = vcmp.eq.s32.totalorder %v3635_v6, 2  ;;  %vm2108_vm13 = vcmp.eq.s32.totalorder %v3637_v25, 2  ;;  %vm2109_vm5 = vcmp.eq.s32.totalorder %v3640_v44, 2 }
 0x145   : > { %2209 = vrot.lane.b32.xlu1 %v3700_v26, %s3091_s24  ;;  %v2123_v38 = vsel %vm2107_vm12, %v3622_v21, 0.0  ;;  %v2124_v4 = vsel %vm2108_vm13, %v3651_v33, 0.0  ;;  %vm2110_vm15 = vcmp.eq.s32.totalorder %v3642_v0, 2  ;;  %v2125_v37 = vsel %vm2109_vm5, %v3617_v5, 0.0 }
 0x146   : > { %2207 = vrot.lane.b32.xlu0 %v3697_v57, %s3091_s24  ;;  %v3843_v57 = vsel %vm2050_vm6, %v3668_v61, 0.0  ;;  %vm2111_vm1 = vcmp.eq.s32.totalorder %v3644_v13, 2  ;;  %vm2112_vm2 = vcmp.eq.s32.totalorder %v3646_v24, 2  ;;  %vm2113_vm3 = vcmp.eq.s32.totalorder %v3653_v41, 2 }
 0x147   : > { %v2127_v10 = vsel %vm2111_vm1, %v3664_v59, 0.0  ;;  %vm2114_vm4 = vcmp.eq.s32.totalorder %v3655_v56, 2  ;;  %v2129_v32 = vsel %vm2113_vm3, %v3660_v42, 0.0  ;;  %vm1522_vm6 = vcmask 31744  }
 0x148   : > { %v2130_v62 = vsel %vm2114_vm4, %v3668_v61, 0.0  ;;  %vm1539_vm7 = vcmask 64512   ;;  %vm1556_vm8 = vcmask 97280  }
 0x149   : > { %2245 = vrot.lane.b32.xlu1 %v2116_v30, %s3092_s25  ;;  %v2121_v30 = vsel %vm2105_vm14, %v3574_v16, 0.0  ;;  %v2126_v16 = vsel %vm2110_vm15, %v3626_v1, 0.0 }
 0x14a   : > { %2243 = vrot.lane.b32.xlu0 %v2115_v34, %s3092_s25  ;;  %v2122_v34 = vsel %vm2106_vm10, %v3583_v11, 0.0  ;;  %v2128_v11 = vsel %vm2112_vm2, %v3678_v28, 0.0 }
 0x14d   : > { %2249 = vrot.lane.b32.xlu1 %v2118_v7, %s3092_s25 }
 0x14e   : > { %2247 = vrot.lane.b32.xlu0 %v2117_v43, %s3092_s25 }
 0x151   : > { %2253 = vrot.lane.b32.xlu1 %v2120_v15, %s3092_s25 }
 0x152   : > { %2251 = vrot.lane.b32.xlu0 %v2119_v52, %s3092_s25 }
 0x155   : > { %2257 = vrot.lane.b32.xlu1 %v2122_v34, %s3092_s25 }
 0x156   : > { %2255 = vrot.lane.b32.xlu0 %v2121_v30, %s3092_s25 }
 0x159   : > { %2261 = vrot.lane.b32.xlu1 %v2124_v4, %s3092_s25 }
 0x15a   : > { %2259 = vrot.lane.b32.xlu0 %v2123_v38, %s3092_s25 }
 0x15d   : > { %2265 = vrot.lane.b32.xlu1 %v2126_v16, %s3092_s25 }
 0x15e   : > { %2263 = vrot.lane.b32.xlu0 %v2125_v37, %s3092_s25 }
 0x161   : > { %2269 = vrot.lane.b32.xlu1 %v2128_v11, %s3092_s25 }
 0x162   : > { %2267 = vrot.lane.b32.xlu0 %v2127_v10, %s3092_s25 }
 0x165   : > { %2273 = vrot.lane.b32.xlu1 %v2130_v62, %s3092_s25 }
 0x166   : > { %2271 = vrot.lane.b32.xlu0 %v2129_v32, %s3092_s25  ;;  %v2947_v36 = vpop.permute.xlu1 %2946  ;;  %s4177_s25 = scalar_lea.vmem %s4307_s14, %s3188_s22 }
 0x167   : > { %v2949_v0 = vunpack.i.h.bf16 %v2947_v36  ;;  %v2948_v13 = vunpack.i.l.bf16 %v2947_v36 }
 0x169   : > { %2309 = vrot.lane.b32.xlu1 %v3708_v12, %s3093_s26 }
 0x16a   : > { %2307 = vrot.lane.b32.xlu0 %v3705_v17, %s3093_s26 }
 0x16c   : > { %v2952_v49 = vpop.permute.xlu0 %2951 }
 0x16d   : > { %2313 = vrot.lane.b32.xlu1 %v3716_v20, %s3093_s26  ;;  %v2954_v21 = vunpack.i.h.bf16 %v2952_v49  ;;  %v2953_v1 = vunpack.i.l.bf16 %v2952_v49 }
 0x16e   : > { %2311 = vrot.lane.b32.xlu0 %v3713_v40, %s3093_s26 }
 0x16f   : > { %v2962_v31 = vpop.permute.xlu1 %2961  ;;  %v1524_v41 = vsel %vm1522_vm6, %v3265_v48, %v2954_v21  ;;  %v1523_v56 = vsel %vm1522_vm6, %v3250_v39, %v2953_v1 }
 0x170   : > { %v3900_v5 = vpop.permute.xlu0 %2956  ;;  %v2964_v24 = vunpack.i.h.bf16 %v2962_v31  ;;  %v2963_v33 = vunpack.i.l.bf16 %v2962_v31 }
 0x171   : > { %2317 = vrot.lane.b32.xlu1 %v3725_v14, %s3093_s26 }
 0x172   : > { %2315 = vrot.lane.b32.xlu0 %v3722_v53, %s3093_s26  ;;  %v1540_v53 = vsel %vm1539_vm7, %v1523_v56, %v2948_v13 }
 0x173   : > { %v2977_v44 = vpop.permute.xlu1 %2976 }
 0x174   : > { %v2967_v22 = vpop.permute.xlu0 %2966  ;;  %v2979_v26 = vunpack.i.h.bf16 %v2977_v44  ;;  %v2978_v17 = vunpack.i.l.bf16 %v2977_v44 }
 0x175   : > { %v2969_v6 = vunpack.i.h.bf16 %v2967_v22  ;;  %v2968_v25 = vunpack.i.l.bf16 %v2967_v22  ;;  %2321 = vrot.lane.b32.xlu1 %v3734_v47, %s3093_s26 }
 0x176   : > { %2319 = vrot.lane.b32.xlu0 %v3731_v2, %s3093_s26 }
 0x177   : > { %v1526_v42 = vsel %vm1522_vm6, %v3259_v46, %v2969_v6  ;;  %v1525_v59 = vsel %vm1522_vm6, %v3257_v45, %v2968_v25  ;;  %v2992_v20 = vpop.permute.xlu1 %2991  ;;  %v1541_v45 = vsel %vm1539_vm7, %v1524_v41, %v2949_v0 }
 0x178   : > { %v1542_v61 = vsel %vm1539_vm7, %v1525_v59, %v2963_v33  ;;  %v1543_v28 = vsel %vm1539_vm7, %v1526_v42, %v2964_v24  ;;  %v2972_v12 = vpop.permute.xlu0 %2971  ;;  %v2993_v11 = vunpack.i.l.bf16 %v2992_v20  ;;  %v4351_v42 = vld [vmem:[#allocation5_spill] sm:$0xff] }
 0x179   : > { %v2974_v48 = vunpack.i.h.bf16 %v2972_v12  ;;  %v2973_v40 = vunpack.i.l.bf16 %v2972_v12  ;;  %v1560_v39 = vsel %vm1556_vm8, %v1543_v28, %v2979_v26  ;;  %v1559_v46 = vsel %vm1556_vm8, %v1542_v61, %v2978_v17  ;;  %2325 = vrot.lane.b32.xlu1 %v3743_v3, %s3093_s26  ;;  %v4352_v61 = vld [vmem:[#allocation4_spill] sm:$0xff] }
 0x17a   : > { %2323 = vrot.lane.b32.xlu0 %v3740_v54, %s3093_s26  ;;  %v1574_v7 = vpack.c.bf16 %v1560_v39, %v1559_v46 }
 0x17b   : > { %v1558_v14 = vsel %vm1556_vm8, %v1541_v45, %v2974_v48  ;;  %v1557_v2 = vsel %vm1556_vm8, %v1540_v53, %v2973_v40  ;;  %v2997_v52 = vpop.permute.xlu1 %2996  ;;  %v4353_v48 = vld [vmem:[#allocation3_spill] sm:$0xff] }
 0x17c   : > { %v1573_v47 = vpack.c.bf16 %v1558_v14, %v1557_v2  ;;  %v2982_v43 = vpop.permute.xlu0 %2981  ;;  %v2999_v15 = vunpack.i.h.bf16 %v2997_v52  ;;  %v2998_v30 = vunpack.i.l.bf16 %v2997_v52 }
 0x17d   : > { %v2984_v34 = vunpack.i.h.bf16 %v2982_v43  ;;  %v2983_v54 = vunpack.i.l.bf16 %v2982_v43  ;;  %2329 = vrot.lane.b32.xlu1 %v3752_v55, %s3093_s26 }
 0x17e   : > { %2863 = vmatprep.mubr.msk.bf16.mxu1 %vm608_vm0, %v1573_v47  ;;  %2327 = vrot.lane.b32.xlu0 %v3749_v35, %s3093_s26  ;;  %v1530_v4 = vsel %vm1522_vm6, %v3306_v19, %v2999_v15  ;;  %v1529_v37 = vsel %vm1522_vm6, %v3304_v18, %v2998_v30  ;;  %v2994_v35 = vunpack.i.h.bf16 %v2992_v20  ;;  %v2959_v19 = vunpack.i.h.bf16 %v3900_v5  ;;  %v4354_v20 = vld [vmem:[#allocation2_spill] sm:$0xff] }
 0x17f   : > { %2864 = vmatmul.mubr.msk.bf16.vlgmr.msra.gmra.mrb[16].mxu1 %vm608_vm0, %v1574_v7  ;;  %v3007_v3 = vpop.permute.xlu1 %3006  ;;  %v1528_v32 = vsel %vm1522_vm6, %v3312_v23, %v2984_v34  ;;  %v1527_v55 = vsel %vm1522_vm6, %v3299_v8, %v2983_v54  ;;  %v2958_v18 = vunpack.i.l.bf16 %v3900_v5  ;;  %v1546_v36 = vsel %vm1539_vm7, %v1529_v37, %v2993_v11 }
 0x180   : > { %v2987_v38 = vpop.permute.xlu0 %2986  ;;  %v3009_v16 = vunpack.i.h.bf16 %v3007_v3  ;;  %v3008_v10 = vunpack.i.l.bf16 %v3007_v3 }
 0x181   : > { %2333 = vrot.lane.b32.xlu1 %v3761_v51, %s3093_s26  ;;  %v1544_v8 = vsel %vm1539_vm7, %v1527_v55, %v2958_v18  ;;  %v1545_v51 = vsel %vm1539_vm7, %v1528_v32, %v2959_v19  ;;  %v2989_v46 = vunpack.i.h.bf16 %v2987_v38  ;;  %v2988_v53 = vunpack.i.l.bf16 %v2987_v38  ;;  %v4355_v55 = vld [vmem:[#allocation7_spill] sm:$0xff]  ;;  %v4356_v18 = vld [vmem:[#allocation6_spill] sm:$0xff] }
 0x182   : > { %2331 = vrot.lane.b32.xlu0 %v3758_v50, %s3093_s26  ;;  %v1547_v50 = vsel %vm1539_vm7, %v1530_v4, %v2994_v35  ;;  %v1563_v1 = vsel %vm1556_vm8, %v1546_v36, %v3008_v10 }
 0x183   : > { %v3022_v21 = vpop.permute.xlu1 %3021  ;;  %v1564_v23 = vsel %vm1556_vm8, %v1547_v50, %v3009_v16 }
 0x184   : > { %v3002_v62 = vpop.permute.xlu0 %3001  ;;  %v1576_v44 = vpack.c.bf16 %v1564_v23, %v1563_v1  ;;  %v3024_v17 = vunpack.i.h.bf16 %v3022_v21  ;;  %v3023_v12 = vunpack.i.l.bf16 %v3022_v21  ;;  %v4358_v21 = vld [vmem:[#allocation8_spill] sm:$0xff] }
 0x185   : > { %v3004_v49 = vunpack.i.h.bf16 %v3002_v62  ;;  %v3003_v31 = vunpack.i.l.bf16 %v3002_v62  ;;  %2337 = vrot.lane.b32.xlu1 %v3770_v63, %s3093_s26 }
 0x186   : > { %2335 = vrot.lane.b32.xlu0 %v3767_v60, %s3093_s26 }
 0x187   : > { %v1562_v5 = vsel %vm1556_vm8, %v1545_v51, %v3004_v49  ;;  %v1561_v22 = vsel %vm1556_vm8, %v1544_v8, %v3003_v31  ;;  %v3027_v0 = vpop.permute.xlu1 %3026  ;;  %v4357_v49 = vld [vmem:[#allocation9_spill] sm:$0xff] }
 0x188   : > { %v1575_v6 = vpack.c.bf16 %v1562_v5, %v1561_v22  ;;  %v3012_v25 = vpop.permute.xlu0 %3011  ;;  %v3029_v13 = vunpack.i.h.bf16 %v3027_v0  ;;  %v3028_v24 = vunpack.i.l.bf16 %v3027_v0 }
 0x189   : > { %v3014_v33 = vunpack.i.h.bf16 %v3012_v25  ;;  %v3013_v41 = vunpack.i.l.bf16 %v3012_v25 }
 0x18a   : > { %2867 = vmatprep.mubr.msk.bf16.mxu1 %vm608_vm0, %v1575_v6  ;;  %v1534_v59 = vsel %vm1522_vm6, %v4351_v42, %v3029_v13  ;;  %v1533_v63 = vsel %vm1522_vm6, %v4352_v61, %v3028_v24 }
 0x18b   : > { %2868 = vmatmul.mubr.msk.bf16.gmra.mrb[20].mxu1 %vm608_vm0, %v1576_v44  ;;  %v3037_v56 = vpop.permute.xlu1 %3036  ;;  %v1532_v40 = vsel %vm1522_vm6, %v4353_v48, %v3014_v33  ;;  %v1531_v39 = vsel %vm1522_vm6, %v4354_v20, %v3013_v41  ;;  %v1550_v14 = vsel %vm1539_vm7, %v1533_v63, %v3023_v12  ;;  %v1551_v2 = vsel %vm1539_vm7, %v1534_v59, %v3024_v17  ;;  %v4360_v12 = vld [vmem:[#allocation11_spill] sm:$0xff] }
 0x18c   : > { %v3017_v60 = vpop.permute.xlu0 %3016  ;;  %v3039_v28 = vunpack.i.h.bf16 %v3037_v56  ;;  %v3038_v26 = vunpack.i.l.bf16 %v3037_v56  ;;  %v1548_v30 = vsel %vm1539_vm7, %v1531_v39, %v2988_v53  ;;  %v1549_v34 = vsel %vm1539_vm7, %v1532_v40, %v2989_v46 }
 0x18d   : > { %v3019_v36 = vunpack.i.h.bf16 %v3017_v60  ;;  %v3018_v50 = vunpack.i.l.bf16 %v3017_v60 }
 0x18e   : > { %v1568_v52 = vsel %vm1556_vm8, %v1551_v2, %v3039_v28  ;;  %v1567_v15 = vsel %vm1556_vm8, %v1550_v14, %v3038_v26  ;;  %v4359_v28 = vld [vmem:[#allocation10_spill] sm:$0xff] }
 0x18f   : > { %v3047_v7 = vpop.permute.xlu1 %3046  ;;  %v1578_v37 = vpack.c.bf16 %v1568_v52, %v1567_v15 }
 0x190   : > { %v3032_v45 = vpop.permute.xlu0 %3031  ;;  %v3049_v8 = vunpack.i.h.bf16 %v3047_v7  ;;  %v3048_v51 = vunpack.i.l.bf16 %v3047_v7 }
 0x191   : > { %v3034_v47 = vunpack.i.h.bf16 %v3032_v45  ;;  %v3033_v43 = vunpack.i.l.bf16 %v3032_v45  ;;  %v4361_v45 = vld [vmem:[#allocation14_spill] sm:$0xff] }
 0x193   : > { %v1566_v54 = vsel %vm1556_vm8, %v1549_v34, %v3034_v47  ;;  %v1565_v38 = vsel %vm1556_vm8, %v1548_v30, %v3033_v43  ;;  %v3052_v35 = vpop.permute.xlu1 %3051  ;;  %v4362_v47 = vld [vmem:[#allocation15_spill] sm:$0xff]  ;;  %v4363_v30 = vld [vmem:[#allocation16_spill] sm:$0xff] }
 0x194   : > { %v1577_v3 = vpack.c.bf16 %v1566_v54, %v1565_v38  ;;  %v3042_v4 = vpop.permute.xlu0 %3041  ;;  %v3054_v11 = vunpack.i.h.bf16 %v3052_v35  ;;  %v3053_v32 = vunpack.i.l.bf16 %v3052_v35  ;;  %v4364_v54 = vld [vmem:[#allocation17_spill] sm:$0xff] }
 0x195   : > { %v3044_v16 = vunpack.i.h.bf16 %v3042_v4  ;;  %v3043_v10 = vunpack.i.l.bf16 %v3042_v4  ;;  %v4365_v4 = vld [vmem:[#allocation18_spill] sm:$0xff] }
 0x196   : > { %2871 = vmatprep.mubr.msk.bf16.mxu1 %vm608_vm0, %v1577_v3  ;;  %v1538_v31 = vsel %vm1522_vm6, %v4357_v49, %v3054_v11  ;;  %v1537_v23 = vsel %vm1522_vm6, %v4358_v21, %v3053_v32  ;;  %v4066_v49 = vld [vmem:[%s4302_s9] ss:$0 sm:$0xff] }
 0x197   : > { %v1536_v19 = vsel %vm1522_vm6, %v4355_v55, %v3044_v16  ;;  %v1535_v62 = vsel %vm1522_vm6, %v4356_v18, %v3043_v10  ;;  %2872 = vmatmul.mubr.msk.bf16.gmra.mrb[24].mxu1 %vm608_vm0, %v1578_v37  ;;  %v3062_v6 = vpop.permute.xlu1 %3061  ;;  %v1554_v41 = vsel %vm1539_vm7, %v1537_v23, %v3048_v51  ;;  %v1555_v60 = vsel %vm1539_vm7, %v1538_v31, %v3049_v8  ;;  %v4366_v10 = vld [vmem:[#allocation19_spill] sm:$0xff]  ;;  %v4367_v55 = vld [vmem:[#allocation20_spill] sm:$0xff] }
 0x198   : > { %v3057_v1 = vpop.permute.xlu0 %3056  ;;  %v1552_v25 = vsel %vm1539_vm7, %v1535_v62, %v3018_v50  ;;  %v1553_v44 = vsel %vm1539_vm7, %v1536_v19, %v3019_v36  ;;  %v3064_v0 = vunpack.i.h.bf16 %v3062_v6  ;;  %v3063_v13 = vunpack.i.l.bf16 %v3062_v6 }
 0x199   : > { %v3059_v5 = vunpack.i.h.bf16 %v3057_v1  ;;  %v3058_v22 = vunpack.i.l.bf16 %v3057_v1 }
 0x19a   : > { %v1571_v42 = vsel %vm1556_vm8, %v1554_v41, %v3063_v13  ;;  %v1572_v59 = vsel %vm1556_vm8, %v1555_v60, %v3064_v0 }
 0x19b   : > { %v1569_v24 = vsel %vm1556_vm8, %v1552_v25, %v3058_v22  ;;  %v1570_v33 = vsel %vm1556_vm8, %v1553_v44, %v3059_v5  ;;  %v1580_v63 = vpack.c.bf16 %v1572_v59, %v1571_v42  ;;  %v2182_v17 = vpop.permute.xlu1 %2181 }
 0x19c   : > { %v1579_v56 = vpack.c.bf16 %v1570_v33, %v1569_v24  ;;  %v2180_v61 = vpop.permute.xlu0 %2179  ;;  %v4005_v48 = vsel %vm608_vm0, %v4360_v12, %v2182_v17 }
 0x19d   : > { %v4000_v26 = vsel %vm608_vm0, %v4359_v28, %v2180_v61 }
 0x19e   : > { %2875 = vmatprep.mubr.msk.bf16.mxu1 %vm608_vm0, %v1579_v56 }
 0x19f   : > { %2876 = vmatmul.mubr.msk.bf16.gmra.mrb[28].mxu1 %vm608_vm0, %v1580_v63  ;;  %v4010_v20 = vpop.permute.xlu1 %2185 }
 0x1a0   : > { %v4008_v40 = vpop.permute.xlu0 %2183 }
 0x1a3   : > { %v2190_v53 = vpop.permute.xlu1 %2189 }
 0x1a4   : > { %v2188_v39 = vpop.permute.xlu0 %2187  ;;  %v4018_v14 = vsel %vm608_vm0, %v4361_v45, %v2190_v53 }
 0x1a5   : > { %v4014_v46 = vsel %vm608_vm0, %v3792_v58, %v2188_v39 }
 0x1a7   : > { %v2194_v7 = vpop.permute.xlu1 %2193 }
 0x1a8   : > { %v2192_v2 = vpop.permute.xlu0 %2191  ;;  %v4026_v52 = vsel %vm608_vm0, %v3804_v29, %v2194_v7 }
 0x1a9   : > { %v4022_v43 = vsel %vm608_vm0, %v4362_v47, %v2192_v2 }
 0x1ab   : > { %v2198_v34 = vpop.permute.xlu1 %2197 }
 0x1ac   : > { %v2196_v15 = vpop.permute.xlu0 %2195  ;;  %v4034_v38 = vsel %vm608_vm0, %v4364_v54, %v2198_v34 }
 0x1ad   : > { %v4030_v58 = vsel %vm608_vm0, %v4363_v30, %v2196_v15 }
 0x1af   : > { %v2202_v16 = vpop.permute.xlu1 %2201 }
 0x1b0   : > { %v2200_v3 = vpop.permute.xlu0 %2199  ;;  %v4042_v29 = vsel %vm608_vm0, %v4366_v10, %v2202_v16 }
 0x1b1   : > { %v4038_v37 = vsel %vm608_vm0, %v4365_v4, %v2200_v3 }
 0x1b3   : > { %v2206_v32 = vpop.permute.xlu1 %2205 }
 0x1b4   : > { %v2204_v35 = vpop.permute.xlu0 %2203  ;;  %v4050_v19 = vsel %vm608_vm0, %v4367_v55, %v2206_v32 }
 0x1b5   : > { %v4046_v11 = vsel %vm608_vm0, %v3827_v9, %v2204_v35  ;;  %v3077_v9 = vld [vmem:[%s4304_s11] sm:$0xff]  }
 0x1b6   : > { %2879 = vmatprep.subr.bf16.mxu0 %v3077_v9 }
 0x1b7   : > { %v2210_v36 = vpop.permute.xlu1 %2209  ;;  %2880 = vmatpush3.bf16.msra.mxu0 %v3077_v9 }
 0x1b8   : > { %v2208_v18 = vpop.permute.xlu0 %2207  ;;  %v4058_v50 = vsel %vm608_vm0, %v3843_v57, %v2210_v36 }
 0x1b9   : > { %v4054_v62 = vsel %vm608_vm0, %v3840_v27, %v2208_v18  ;;  %v4071_v27 = vld [vmem:[%s4303_s10] ss:$0 sm:$0xff] }
 0x252   : > { %v2865_v31 = vpop.f32.mrb[16].mxu1 }
 0x253   : > { %v1719_v57 = vmul.f32 %v2865_v31, %v4066_v49  ;;  %v1647_v21 = vpop.f32.mrb[17].mxu1 }
 0x254   : > { %v1717_v23 = vmul.f32 %v4066_v49, %v1647_v21  ;;  %v2866_v1 = vpop.f32.mrb[18].mxu1 }
 0x255   : > { %v1742_v8 = vadd.f32 %v4071_v27, %v1719_v57  ;;  %v1720_v51 = vmul.f32 %v2866_v1, %v4066_v49  ;;  %v1650_v5 = vpop.f32.mrb[19].mxu1 }
 0x256   : > { %v1740_v22 = vadd.f32 %v4071_v27, %v1717_v23  ;;  %v1718_v6 = vmul.f32 %v4066_v49, %v1650_v5 }
 0x257   : > { %v1774_v25 = vmul.f32 0.25, %v1742_v8  ;;  %v1743_v44 = vadd.f32 %v4071_v27, %v1720_v51  ;;  %vm1758_vm11 = vcmp.ge.f32.partialorder %v1742_v8, 0.0 }
 0x258   : > { %v1772_v0 = vmul.f32 0.25, %v1740_v22  ;;  %v1741_v13 = vadd.f32 %v4071_v27, %v1718_v6  ;;  %vm1756_vm9 = vcmp.ge.f32.partialorder %v1740_v22, 0.0 }
 0x259   : > { %vm1759_vm14 = vcmp.ge.f32.partialorder %v1743_v44, 0.0  ;;  %v1775_v24 = vmul.f32 0.25, %v1743_v44  ;;  %v1790_v41 = vsel %vm1758_vm11, %v1742_v8, %v1774_v25 }
 0x25a   : > { %vm1757_vm10 = vcmp.ge.f32.partialorder %v1741_v13, 0.0  ;;  %v1773_v33 = vmul.f32 0.25, %v1741_v13  ;;  %v1788_v56 = vsel %vm1756_vm9, %v1740_v22, %v1772_v0  ;;  %vm2371_vm9 = vcmask 261120  }
 0x25b   : > { %v1791_v60 = vsel %vm1759_vm14, %v1743_v44, %v1775_v24  ;;  %vm2388_vm14 = vcmask 392192  }
 0x25c   : > { %v1805_v42 = vpack.c.bf16 %v1791_v60, %v1790_v41  ;;  %v1789_v59 = vsel %vm1757_vm10, %v1741_v13, %v1773_v33 }
 0x25d   : > { %v1804_v61 = vpack.c.bf16 %v1789_v59, %v1788_v56 }
 0x25e   : > { %v2869_v63 = vpop.f32.mrb[20].mxu1 }
 0x25f   : > { %v1723_v28 = vmul.f32 %v2869_v63, %v4066_v49  ;;  %v1663_v17 = vpop.f32.mrb[21].mxu1  ;;  %2881 = vmatprep.mubr.msk.bf16.mxu0 %vm608_vm0, %v1804_v61 }
 0x260   : > { %v1721_v12 = vmul.f32 %v4066_v49, %v1663_v17  ;;  %v2870_v39 = vpop.f32.mrb[22].mxu1  ;;  %2882 = vmatmul.mubr.msk.bf16.vlgmr.msra.gmra.mrb[20].mxu0 %vm608_vm0, %v1805_v42 }
 0x261   : > { %v1746_v53 = vadd.f32 %v4071_v27, %v1723_v28  ;;  %v1724_v45 = vmul.f32 %v2870_v39, %v4066_v49  ;;  %v1666_v2 = vpop.f32.mrb[23].mxu1 }
 0x262   : > { %v1744_v47 = vadd.f32 %v4071_v27, %v1721_v12  ;;  %v1722_v7 = vmul.f32 %v4066_v49, %v1666_v2 }
 0x263   : > { %v1778_v15 = vmul.f32 0.25, %v1746_v53  ;;  %v1747_v30 = vadd.f32 %v4071_v27, %v1724_v45  ;;  %vm1762_vm12 = vcmp.ge.f32.partialorder %v1746_v53, 0.0 }
 0x264   : > { %v1776_v34 = vmul.f32 0.25, %v1744_v47  ;;  %v1745_v54 = vadd.f32 %v4071_v27, %v1722_v7  ;;  %vm1760_vm13 = vcmp.ge.f32.partialorder %v1744_v47, 0.0 }
 0x265   : > { %vm1763_vm5 = vcmp.ge.f32.partialorder %v1747_v30, 0.0  ;;  %v1779_v3 = vmul.f32 0.25, %v1747_v30  ;;  %v1794_v16 = vsel %vm1762_vm12, %v1746_v53, %v1778_v15  ;;  %vm2533_vm12 = vcmask 519168  }
 0x266   : > { %vm1761_vm15 = vcmp.ge.f32.partialorder %v1745_v54, 0.0  ;;  %v1777_v4 = vmul.f32 0.25, %v1745_v54  ;;  %v1792_v35 = vsel %vm1760_vm13, %v1744_v47, %v1776_v34 }
 0x267   : > { %v1795_v10 = vsel %vm1763_vm5, %v1747_v30, %v1779_v3 }
 0x268   : > { %v1793_v32 = vsel %vm1761_vm15, %v1745_v54, %v1777_v4  ;;  %v1807_v55 = vpack.c.bf16 %v1795_v10, %v1794_v16 }
 0x269   : > { %v1806_v18 = vpack.c.bf16 %v1793_v32, %v1792_v35  ;;  %v2244_v32 = vpop.permute.xlu0 %2243 }
 0x26a   : > { %v2873_v36 = vpop.f32.mrb[24].mxu1 }
 0x26b   : > { %v1727_v9 = vmul.f32 %v2873_v36, %v4066_v49  ;;  %v1679_v31 = vpop.f32.mrb[25].mxu1  ;;  %2885 = vmatprep.mubr.msk.bf16.mxu0 %vm608_vm0, %v1806_v18 }
 0x26c   : > { %v1725_v57 = vmul.f32 %v4066_v49, %v1679_v31  ;;  %v2874_v21 = vpop.f32.mrb[26].mxu1  ;;  %2886 = vmatmul.mubr.msk.bf16.gmra.mrb[24].mxu0 %vm608_vm0, %v1807_v55 }
 0x26d   : > { %v1750_v23 = vadd.f32 %v4071_v27, %v1727_v9  ;;  %v1728_v1 = vmul.f32 %v2874_v21, %v4066_v49  ;;  %v1682_v8 = vpop.f32.mrb[27].mxu1  ;;  %v2248_v55 = vpop.permute.xlu0 %2247 }
 0x26e   : > { %v1748_v51 = vadd.f32 %v4071_v27, %v1725_v57  ;;  %v1726_v5 = vmul.f32 %v4066_v49, %v1682_v8 }
 0x26f   : > { %v1782_v22 = vmul.f32 0.25, %v1750_v23  ;;  %v1751_v6 = vadd.f32 %v4071_v27, %v1728_v1  ;;  %vm1766_vm1 = vcmp.ge.f32.partialorder %v1750_v23, 0.0 }
 0x270   : > { %v1780_v25 = vmul.f32 0.25, %v1748_v51  ;;  %v1749_v44 = vadd.f32 %v4071_v27, %v1726_v5  ;;  %vm1764_vm2 = vcmp.ge.f32.partialorder %v1748_v51, 0.0 }
 0x271   : > { %vm1767_vm3 = vcmp.ge.f32.partialorder %v1751_v6, 0.0  ;;  %v1783_v0 = vmul.f32 0.25, %v1751_v6  ;;  %v1798_v33 = vsel %vm1766_vm1, %v1750_v23, %v1782_v22  ;;  %v4113_v18 = vpop.permute.xlu0 %2251 }
 0x272   : > { %vm1765_vm4 = vcmp.ge.f32.partialorder %v1749_v44, 0.0  ;;  %v1781_v13 = vmul.f32 0.25, %v1749_v44  ;;  %v2877_v24 = vpop.f32.mrb[28].mxu1  ;;  %v1796_v42 = vsel %vm1764_vm2, %v1748_v51, %v1780_v25 }
 0x273   : > { %v1799_v41 = vsel %vm1767_vm3, %v1751_v6, %v1783_v0  ;;  %v1731_v60 = vmul.f32 %v2877_v24, %v4066_v49  ;;  %v1695_v56 = vpop.f32.mrb[29].mxu1 }
 0x274   : > { %v1797_v59 = vsel %vm1765_vm4, %v1749_v44, %v1781_v13  ;;  %v1729_v61 = vmul.f32 %v4066_v49, %v1695_v56  ;;  %v2878_v63 = vpop.f32.mrb[30].mxu1  ;;  %v1809_v28 = vpack.c.bf16 %v1799_v41, %v1798_v33  ;;  %v4368_v13 = vld [vmem:[#allocation12_spill] sm:$0xff]  ;;  %v4143_v33 = vld [vmem:[%s4305_s12] ss:$0 sm:$0xff] }
 0x275   : > { %v1754_v17 = vadd.f32 %v4071_v27, %v1731_v60  ;;  %v1732_v12 = vmul.f32 %v2878_v63, %v4066_v49  ;;  %v1698_v39 = vpop.f32.mrb[31].mxu1  ;;  %v1808_v53 = vpack.c.bf16 %v1797_v59, %v1796_v42  ;;  %v4115_v9 = vpop.permute.xlu0 %2255  ;;  %v2357_v24 = vsel %vm608_vm0, %v4368_v13, %v4008_v40  ;;  %v4369_v60 = vld [vmem:[#allocation13_spill] sm:$0xff] }
 0x276   : > { %v1752_v45 = vadd.f32 %v4071_v27, %v1729_v61  ;;  %v1730_v2 = vmul.f32 %v4066_v49, %v1698_v39  ;;  %v2358_v56 = vsel %vm608_vm0, %v4369_v60, %v4010_v20  ;;  %v4153_v61 = vld [vmem:[%s4306_s13] ss:$0 sm:$0xff]  ;;  %v2374_v40 = vsel %vm2371_vm9, %v2357_v24, %v2248_v55 }
 0x277   : > { %v1786_v47 = vmul.f32 0.25, %v1754_v17  ;;  %v1755_v7 = vadd.f32 %v4071_v27, %v1732_v12  ;;  %2889 = vmatprep.mubr.msk.bf16.mxu0 %vm608_vm0, %v1808_v53  ;;  %vm1770_vm6 = vcmp.ge.f32.partialorder %v1754_v17, 0.0 }
 0x278   : > { %v1784_v15 = vmul.f32 0.25, %v1752_v45  ;;  %v1753_v30 = vadd.f32 %v4071_v27, %v1730_v2  ;;  %2890 = vmatmul.mubr.msk.bf16.gmra.mrb[28].mxu0 %vm608_vm0, %v1809_v28  ;;  %vm1768_vm7 = vcmp.ge.f32.partialorder %v1752_v45, 0.0  ;;  %v2246_v27 = vpop.permute.xlu1 %2245 }
 0x279   : > { %vm1771_vm8 = vcmp.ge.f32.partialorder %v1755_v7, 0.0  ;;  %v1787_v34 = vmul.f32 0.25, %v1755_v7  ;;  %v1802_v3 = vsel %vm1770_vm6, %v1754_v17, %v1786_v47  ;;  %v4119_v57 = vpop.permute.xlu0 %2259  ;;  %v2372_v17 = vsel %vm2371_vm9, %v4000_v26, %v2244_v32 }
 0x27a   : > { %vm1769_vm11 = vcmp.ge.f32.partialorder %v1753_v30, 0.0  ;;  %v1785_v54 = vmul.f32 0.25, %v1753_v30  ;;  %v1800_v16 = vsel %vm1768_vm7, %v1752_v45, %v1784_v15  ;;  %v2373_v47 = vsel %vm2371_vm9, %v4005_v48, %v2246_v27 }
 0x27b   : > { %v1803_v4 = vsel %vm1771_vm8, %v1755_v7, %v1787_v34 }
 0x27c   : > { %v1801_v49 = vsel %vm1769_vm11, %v1753_v30, %v1785_v54  ;;  %v1811_v10 = vpack.c.bf16 %v1803_v4, %v1802_v3  ;;  %v2250_v36 = vpop.permute.xlu1 %2249 }
 0x27d   : > { %v1810_v35 = vpack.c.bf16 %v1801_v49, %v1800_v16  ;;  %v4123_v23 = vpop.permute.xlu0 %2263  ;;  %v2375_v20 = vsel %vm2371_vm9, %v2358_v56, %v2250_v36 }
 0x27f   : > { %2893 = vmatprep.mubr.msk.bf16.mxu0 %vm608_vm0, %v1810_v35 }
 0x280   : > { %2894 = vmatmul.mubr.msk.bf16.gmra.mrb[32].mxu0 %vm608_vm0, %v1811_v10  ;;  %v4117_v31 = vpop.permute.xlu1 %2253 }
 0x281   : > { %v4127_v8 = vpop.permute.xlu0 %2267 }
 0x284   : > { %v4121_v21 = vpop.permute.xlu1 %2257 }
 0x285   : > { %v4131_v5 = vpop.permute.xlu0 %2271 }
 0x288   : > { %v4125_v1 = vpop.permute.xlu1 %2261 }
 0x289   : > { %v2308_v6 = vpop.permute.xlu0 %2307 }
 0x28a   : > { %v2389_v26 = vsel %vm2388_vm14, %v2372_v17, %v2308_v6 }
 0x28c   : > { %v4129_v51 = vpop.permute.xlu1 %2265 }
 0x28d   : > { %v2312_v44 = vpop.permute.xlu0 %2311 }
 0x28e   : > { %v2391_v7 = vsel %vm2388_vm14, %v2374_v40, %v2312_v44 }
 0x290   : > { %v4133_v22 = vpop.permute.xlu1 %2269 }
 0x291   : > { %v4145_v41 = vpop.permute.xlu0 %2315 }
 0x294   : > { %v4135_v25 = vpop.permute.xlu1 %2273 }
 0x295   : > { %v2320_v34 = vpop.permute.xlu0 %2319 }
 0x298   : > { %v2310_v0 = vpop.permute.xlu1 %2309 }
 0x299   : > { %v2390_v48 = vsel %vm2388_vm14, %v2373_v47, %v2310_v0  ;;  %v4179_v24 = vpop.permute.xlu0 %2323 }
 0x29c   : > { %v2314_v42 = vpop.permute.xlu1 %2313 }
 0x29d   : > { %v2392_v4 = vsel %vm2388_vm14, %v2375_v20, %v2314_v42  ;;  %v2376_v20 = vsel %vm2371_vm9, %v4014_v46, %v4113_v18  ;;  %v2377_v46 = vsel %vm2371_vm9, %v4018_v14, %v4117_v31 }
 0x2a0   : > { %v2318_v16 = vpop.permute.xlu1 %2317 }
 0x2a1   : > { %v2394_v14 = vsel %vm2388_vm14, %v2377_v46, %v2318_v16 }
 0x2a4   : > { %v2322_v42 = vpop.permute.xlu1 %2321 }
 0x333   : > { %v2883_v59 = vpop.f32.mrb[20].mxu0 }
 0x334   : > { %v1950_v63 = vmul.f32 %v2883_v59, %v4143_v33  ;;  %v1878_v28 = vpop.f32.mrb[21].mxu0 }
 0x335   : > { %v1948_v12 = vmul.f32 %v4143_v33, %v1878_v28  ;;  %v2884_v39 = vpop.f32.mrb[22].mxu0  ;;  %v2378_v28 = vsel %vm2371_vm9, %v4022_v43, %v4115_v9 }
 0x336   : > { %v1973_v53 = vadd.f32 %v4153_v61, %v1950_v63  ;;  %v1951_v45 = vmul.f32 %v2884_v39, %v4143_v33  ;;  %v1881_v2 = vpop.f32.mrb[23].mxu0  ;;  %v2395_v18 = vsel %vm2388_vm14, %v2378_v28, %v2320_v34  ;;  %v2381_v28 = vsel %vm2371_vm9, %v4034_v38, %v4125_v1 }
 0x337   : > { %v1971_v15 = vadd.f32 %v4153_v61, %v1948_v12  ;;  %v1949_v30 = vmul.f32 %v4143_v33, %v1881_v2  ;;  %v2379_v2 = vsel %vm2371_vm9, %v4026_v52, %v4121_v21  ;;  %v2393_v52 = vsel %vm2388_vm14, %v2376_v20, %v4145_v41  ;;  %v2328_v21 = vpop.permute.xlu0 %2327 }
 0x338   : > { %v2407_v54 = vadd.f32 %v2391_v7, %v1973_v53  ;;  %v1974_v3 = vadd.f32 %v4153_v61, %v1951_v45  ;;  %v2385_v1 = vsel %vm2371_vm9, %v4050_v19, %v4133_v22  ;;  %v2387_v19 = vsel %vm2371_vm9, %v4058_v50, %v4135_v25 }
 0x339   : > { %v2405_v49 = vadd.f32 %v2389_v26, %v1971_v15  ;;  %v1972_v10 = vadd.f32 %v4153_v61, %v1949_v30 }
 0x33a   : > { %vm2423_vm0 = vcmp.ge.f32.partialorder %v2407_v54, 0.0  ;;  %v2439_v35 = vmul.f32 0.25, %v2407_v54  ;;  %v2408_v32 = vadd.f32 %v2392_v4, %v1974_v3  ;;  %v2326_v3 = vpop.permute.xlu1 %2325 }
 0x33b   : > { %vm2421_vm10 = vcmp.ge.f32.partialorder %v2405_v49, 0.0  ;;  %v2437_v55 = vmul.f32 0.25, %v2405_v49  ;;  %v2406_v27 = vadd.f32 %v2390_v48, %v1972_v10 }
 0x33c   : > { %v2455_v36 = vsel %vm2423_vm0, %v2407_v54, %v2439_v35  ;;  %vm2424_vm13 = vcmp.ge.f32.partialorder %v2408_v32, 0.0  ;;  %v2440_v6 = vmul.f32 0.25, %v2408_v32  ;;  %v2396_v54 = vsel %vm2388_vm14, %v2379_v2, %v2322_v42 }
 0x33d   : > { %v2728_v44 = vpack.c.bf16 %v2455_v36, %v2455_v36  ;;  %v2453_v13 = vsel %vm2421_vm10, %v2405_v49, %v2437_v55  ;;  %vm2422_vm5 = vcmp.ge.f32.partialorder %v2406_v27, 0.0  ;;  %v2438_v0 = vmul.f32 0.25, %v2406_v27  ;;  %v4214_v36 = vpop.permute.xlu0 %2331 }
 0x33e   : > { %v2726_v60 = vpack.c.bf16 %v2453_v13, %v2453_v13  ;;  %v2456_v56 = vsel %vm2424_vm13, %v2408_v32, %v2440_v6 }
 0x33f   : > { %2536 = vst.msk [vmem:[%s4177_s25 + $0x8] sm:$0xf] %vm2533_vm12, %v2728_v44  ;;  %v2729_v59 = vpack.c.bf16 %v2456_v56, %v2456_v56  ;;  %v2454_v40 = vsel %vm2422_vm5, %v2406_v27, %v2438_v0  ;;  %v2887_v63 = vpop.f32.mrb[24].mxu0  ;;  %v2330_v44 = vpop.permute.xlu1 %2329  ;;  %v2382_v56 = vsel %vm2371_vm9, %v4038_v37, %v4123_v23  ;;  %v2383_v37 = vsel %vm2371_vm9, %v4042_v29, %v4129_v51 }
 0x340   : > { %2534 = vst.msk [vmem:[%s4177_s25] sm:$0xf] %vm2533_vm12, %v2726_v60  ;;  %v2727_v17 = vpack.c.bf16 %v2454_v40, %v2454_v40  ;;  %v1954_v12 = vmul.f32 %v2887_v63, %v4143_v33  ;;  %v1894_v39 = vpop.f32.mrb[25].mxu0  ;;  %v2380_v63 = vsel %vm2371_vm9, %v4030_v58, %v4119_v57  ;;  %v2384_v23 = vsel %vm2371_vm9, %v4046_v11, %v4127_v8 }
 0x341   : > { %2537 = vst.msk [vmem:[%s4177_s25 + $0xc] sm:$0xf] %vm2533_vm12, %v2729_v59  ;;  %v1952_v53 = vmul.f32 %v4143_v33, %v1894_v39  ;;  %v2888_v45 = vpop.f32.mrb[26].mxu0  ;;  %v2399_v39 = vsel %vm2388_vm14, %v2382_v56, %v2328_v21  ;;  %v2386_v11 = vsel %vm2371_vm9, %v4054_v62, %v4131_v5  ;;  %v2397_v8 = vsel %vm2388_vm14, %v2380_v63, %v4179_v24  ;;  %v2336_v51 = vpop.permute.xlu0 %2335 }
 0x342   : > { %2535 = vst.msk [vmem:[%s4177_s25 + $0x4] sm:$0xf] %vm2533_vm12, %v2727_v17  ;;  %v1977_v43 = vadd.f32 %v4153_v61, %v1954_v12  ;;  %v1955_v9 = vmul.f32 %v2888_v45, %v4143_v33  ;;  %v1897_v47 = vpop.f32.mrb[27].mxu0  ;;  %v2400_v22 = vsel %vm2388_vm14, %v2383_v37, %v2330_v44  ;;  %v2403_v24 = vsel %vm2388_vm14, %v2386_v11, %v2336_v51 }
 0x343   : > { %v1975_v7 = vadd.f32 %v4153_v61, %v1952_v53  ;;  %v1953_v15 = vmul.f32 %v4143_v33, %v1897_v47  ;;  %v2334_v2 = vpop.permute.xlu1 %2333  ;;  %v2398_v47 = vsel %vm2388_vm14, %v2381_v28, %v2326_v3 }
 0x344   : > { %v2411_v30 = vadd.f32 %v2395_v18, %v1977_v43  ;;  %v1978_v26 = vadd.f32 %v4153_v61, %v1955_v9 }
 0x345   : > { %v2409_v4 = vadd.f32 %v2393_v52, %v1975_v7  ;;  %v1976_v49 = vadd.f32 %v4153_v61, %v1953_v15 }
 0x346   : > { %vm2427_vm15 = vcmp.ge.f32.partialorder %v2411_v30, 0.0  ;;  %v2443_v31 = vmul.f32 0.25, %v2411_v30  ;;  %v2412_v34 = vadd.f32 %v2396_v54, %v1978_v26 }
 0x347   : > { %vm2425_vm1 = vcmp.ge.f32.partialorder %v2409_v4, 0.0  ;;  %v2441_v10 = vmul.f32 0.25, %v2409_v4  ;;  %v2410_v48 = vadd.f32 %v2394_v14, %v1976_v49 }
 0x348   : > { %v2459_v41 = vsel %vm2427_vm15, %v2411_v30, %v2443_v31  ;;  %vm2428_vm2 = vcmp.ge.f32.partialorder %v2412_v34, 0.0  ;;  %v2444_v35 = vmul.f32 0.25, %v2412_v34 }
 0x349   : > { %v2732_v32 = vpack.c.bf16 %v2459_v41, %v2459_v41  ;;  %v2457_v55 = vsel %vm2425_vm1, %v2409_v4, %v2441_v10  ;;  %vm2426_vm3 = vcmp.ge.f32.partialorder %v2410_v48, 0.0  ;;  %v2442_v27 = vmul.f32 0.25, %v2410_v48 }
 0x34a   : > { %v2730_v6 = vpack.c.bf16 %v2457_v55, %v2457_v55  ;;  %v2460_v16 = vsel %vm2428_vm2, %v2412_v34, %v2444_v35  ;;  %v2338_v34 = vpop.permute.xlu1 %2337 }
 0x34b   : > { %2540 = vst.msk [vmem:[%s4177_s25 + $0x18] sm:$0xf] %vm2533_vm12, %v2732_v32  ;;  %v2733_v13 = vpack.c.bf16 %v2460_v16, %v2460_v16  ;;  %v2458_v0 = vsel %vm2426_vm3, %v2410_v48, %v2442_v27  ;;  %v2891_v60 = vpop.f32.mrb[28].mxu0  ;;  %v2402_v16 = vsel %vm2388_vm14, %v2385_v1, %v2334_v2 }
 0x34c   : > { %2538 = vst.msk [vmem:[%s4177_s25 + $0x10] sm:$0xf] %vm2533_vm12, %v2730_v6  ;;  %v2731_v42 = vpack.c.bf16 %v2458_v0, %v2458_v0  ;;  %v1958_v59 = vmul.f32 %v2891_v60, %v4143_v33  ;;  %v1910_v40 = vpop.f32.mrb[29].mxu0  ;;  %v2401_v6 = vsel %vm2388_vm14, %v2384_v23, %v4214_v36  ;;  %v2404_v0 = vsel %vm2388_vm14, %v2387_v19, %v2338_v34 }
 0x34d   : > { %2541 = vst.msk [vmem:[%s4177_s25 + $0x1c] sm:$0xf] %vm2533_vm12, %v2733_v13  ;;  %v1956_v17 = vmul.f32 %v4143_v33, %v1910_v40  ;;  %v2892_v12 = vpop.f32.mrb[30].mxu0 }
 0x34e   : > { %2539 = vst.msk [vmem:[%s4177_s25 + $0x14] sm:$0xf] %vm2533_vm12, %v2731_v42  ;;  %v1981_v58 = vadd.f32 %v4153_v61, %v1958_v59  ;;  %v1959_v57 = vmul.f32 %v2892_v12, %v4143_v33  ;;  %v1913_v38 = vpop.f32.mrb[31].mxu0 }
 0x34f   : > { %v1979_v20 = vadd.f32 %v4153_v61, %v1956_v17  ;;  %v1957_v29 = vmul.f32 %v4143_v33, %v1913_v38 }
 0x350   : > { %v2415_v53 = vadd.f32 %v2399_v39, %v1981_v58  ;;  %v1982_v45 = vadd.f32 %v4153_v61, %v1959_v57 }
 0x351   : > { %v2413_v43 = vadd.f32 %v2397_v8, %v1979_v20  ;;  %v1980_v9 = vadd.f32 %v4153_v61, %v1957_v29 }
 0x352   : > { %vm2431_vm4 = vcmp.ge.f32.partialorder %v2415_v53, 0.0  ;;  %v2447_v62 = vmul.f32 0.25, %v2415_v53  ;;  %v2416_v5 = vadd.f32 %v2400_v22, %v1982_v45 }
 0x353   : > { %vm2429_vm6 = vcmp.ge.f32.partialorder %v2413_v43, 0.0  ;;  %v2445_v46 = vmul.f32 0.25, %v2413_v43  ;;  %v2414_v18 = vadd.f32 %v2398_v47, %v1980_v9  ;;  %v2895_v7 = vpop.f32.mrb[32].mxu0 }
 0x354   : > { %v2463_v15 = vsel %vm2431_vm4, %v2415_v53, %v2447_v62  ;;  %vm2432_vm7 = vcmp.ge.f32.partialorder %v2416_v5, 0.0  ;;  %v2448_v50 = vmul.f32 0.25, %v2416_v5  ;;  %v1962_v25 = vmul.f32 %v2895_v7, %v4143_v33  ;;  %v1926_v52 = vpop.f32.mrb[33].mxu0 }
 0x355   : > { %v2736_v21 = vpack.c.bf16 %v2463_v15, %v2463_v15  ;;  %v2461_v30 = vsel %vm2429_vm6, %v2413_v43, %v2445_v46  ;;  %vm2430_vm8 = vcmp.ge.f32.partialorder %v2414_v18, 0.0  ;;  %v2446_v26 = vmul.f32 0.25, %v2414_v18  ;;  %v2896_v54 = vpop.f32.mrb[34].mxu0 }
 0x356   : > { %v2734_v3 = vpack.c.bf16 %v2461_v30, %v2461_v30  ;;  %v2464_v4 = vsel %vm2432_vm7, %v2416_v5, %v2448_v50  ;;  %v1985_v49 = vadd.f32 %v4153_v61, %v1962_v25  ;;  %v1960_v14 = vmul.f32 %v4143_v33, %v1926_v52  ;;  %v1929_v31 = vpop.f32.mrb[35].mxu0 }
 0x357   : > { %2544 = vst.msk [vmem:[%s4177_s25 + $0x28] sm:$0xf] %vm2533_vm12, %v2736_v21  ;;  %v2737_v10 = vpack.c.bf16 %v2464_v4, %v2464_v4  ;;  %v2462_v48 = vsel %vm2430_vm8, %v2414_v18, %v2446_v26  ;;  %v1963_v41 = vmul.f32 %v2896_v54, %v4143_v33  ;;  %v1961_v35 = vmul.f32 %v4143_v33, %v1929_v31 }
 0x358   : > { %2542 = vst.msk [vmem:[%s4177_s25 + $0x20] sm:$0xf] %vm2533_vm12, %v2734_v3  ;;  %v2735_v32 = vpack.c.bf16 %v2462_v48, %v2462_v48  ;;  %v2419_v55 = vadd.f32 %v2403_v24, %v1985_v49  ;;  %v1983_v27 = vadd.f32 %v4153_v61, %v1960_v14 }
 0x359   : > { %2545 = vst.msk [vmem:[%s4177_s25 + $0x2c] sm:$0xf] %vm2533_vm12, %v2737_v10  ;;  %v1986_v44 = vadd.f32 %v4153_v61, %v1963_v41  ;;  %v1984_v13 = vadd.f32 %v4153_v61, %v1961_v35 }
 0x35a   : > { %2543 = vst.msk [vmem:[%s4177_s25 + $0x24] sm:$0xf] %vm2533_vm12, %v2735_v32  ;;  %vm2435_vm11 = vcmp.ge.f32.partialorder %v2419_v55, 0.0  ;;  %v2451_v33 = vmul.f32 0.25, %v2419_v55  ;;  %v2417_v60 = vadd.f32 %v2401_v6, %v1983_v27 }
 0x35b   : > { %v2420_v56 = vadd.f32 %v2404_v0, %v1986_v44  ;;  %v2418_v42 = vadd.f32 %v2402_v16, %v1984_v13 }
 0x35c   : > { %v2467_v36 = vsel %vm2435_vm11, %v2419_v55, %v2451_v33  ;;  %vm2433_vm9 = vcmp.ge.f32.partialorder %v2417_v60, 0.0  ;;  %v2449_v59 = vmul.f32 0.25, %v2417_v60 }
 0x35d   : > { %v2740_v40 = vpack.c.bf16 %v2467_v36, %v2467_v36  ;;  %vm2436_vm0 = vcmp.ge.f32.partialorder %v2420_v56, 0.0  ;;  %v2452_v63 = vmul.f32 0.25, %v2420_v56  ;;  %vm2434_vm10 = vcmp.ge.f32.partialorder %v2418_v42, 0.0 }
 0x35e   : > { %v2465_v61 = vsel %vm2433_vm9, %v2417_v60, %v2449_v59  ;;  %v2450_v28 = vmul.f32 0.25, %v2418_v42 }
 0x35f   : > { %2548 = vst.msk [vmem:[%s4177_s25 + $0x38] sm:$0xf] %vm2533_vm12, %v2740_v40  ;;  %v2738_v17 = vpack.c.bf16 %v2465_v61, %v2465_v61  ;;  %v2468_v12 = vsel %vm2436_vm0, %v2420_v56, %v2452_v63 }
 0x360   : > { %v2741_v37 = vpack.c.bf16 %v2468_v12, %v2468_v12  ;;  %v2466_v23 = vsel %vm2434_vm10, %v2418_v42, %v2450_v28 }
 0x361   : > { %2546 = vst.msk [vmem:[%s4177_s25 + $0x30] sm:$0xf] %vm2533_vm12, %v2738_v17  ;;  %v2739_v58 = vpack.c.bf16 %v2466_v23, %v2466_v23 }
 0x362   : > { %2549 = vst.msk [vmem:[%s4177_s25 + $0x3c] sm:$0xf] %vm2533_vm12, %v2741_v37 }
 0x363   : > { %2547 = vst.msk [vmem:[%s4177_s25 + $0x34] sm:$0xf] %vm2533_vm12, %v2739_v58 }
 0x364 PF: > { %s24_s29 = sadd.s32 1, %s3084_s29  }
 0x365   : > { %p21_p9 = scmp.ge.s32.totalorder %s24_s29, 6  }
 0x367   :  { %23 = sbr.rel (!%p21_p9) target bundleno = 1 (0x1), region = 112 }

</bundles_post_ra>
